<compile_context>
chip_gen: v5e
topology: v5e:2x2
jax: 0.10.0
libtpu: 0.0.40
codegen_flags: <defaults>
</compile_context>

<pallas_src>
import functools

import jax
import jax.numpy as jnp
from jax.experimental import pallas as pl
from jax.experimental.pallas import tpu as pltpu


def _round_up(n, m):
    return ((n + m - 1) // m) * m


# ---------------------------------------------------------------------------
# Kernel: one batch tile of the fused 4-layer MLP.
# ---------------------------------------------------------------------------
def actor_kernel(x_ref, w_ref, wmu_ref, b_ref, o_ref, *,
                 obs_pad, hidden, act_pad):
    """
    x_ref   : (TB, obs_pad)                 f32  activation tile
    w_ref   : (obs_pad + 2*hidden, hidden)  bf16 row-stacked [w1; w2; w3]
    wmu_ref : (hidden, act_pad)             bf16
    b_ref   : (4, max(hidden, act_pad))     f32  rows = [b1, b2, b3, bmu]
    o_ref   : (TB, act_pad)                 output tile
    """
    bf16 = jnp.bfloat16
    f32 = jnp.float32

    # Static slices of the consolidated weight / bias buffers.
    w1 = w_ref[0:obs_pad, :]
    w2 = w_ref[obs_pad:obs_pad + hidden, :]
    w3 = w_ref[obs_pad + hidden:obs_pad + 2 * hidden, :]
    b1 = b_ref[0:1, 0:hidden]
    b2 = b_ref[1:2, 0:hidden]
    b3 = b_ref[2:3, 0:hidden]
    bmu = b_ref[3:4, 0:act_pad]

    x = x_ref[...]                                               # (TB, obs_pad) f32
    h = jnp.dot(x.astype(bf16), w1, preferred_element_type=f32) + b1
    h = jnp.maximum(h, 0.0)
    h = jnp.dot(h.astype(bf16), w2, preferred_element_type=f32) + b2
    h = jnp.maximum(h, 0.0)
    h = jnp.dot(h.astype(bf16), w3, preferred_element_type=f32) + b3
    h = jnp.maximum(h, 0.0)
    mu = jnp.dot(h.astype(bf16), wmu_ref[...], preferred_element_type=f32) + bmu
    o_ref[...] = jnp.tanh(mu).astype(o_ref.dtype)                # (TB, act_pad)


# ---------------------------------------------------------------------------
# One-time parameter packing (pad to lane-dense widths, cast to bf16, stack).
# ---------------------------------------------------------------------------
def prepare_actor_params(params):
    obs_dim, hidden = params["w1"].shape
    act_dim = params["wmu"].shape[1]
    obs_pad = _round_up(max(obs_dim, 128), 128)
    act_pad = _round_up(max(act_dim, 128), 128)
    bias_w = max(hidden, act_pad)
    bf16 = jnp.bfloat16

    wstack = jnp.zeros((obs_pad + 2 * hidden, hidden), bf16)
    wstack = wstack.at[:obs_dim, :].set(params["w1"].astype(bf16))
    wstack = wstack.at[obs_pad:obs_pad + hidden, :].set(params["w2"].astype(bf16))
    wstack = wstack.at[obs_pad + hidden:obs_pad + 2 * hidden, :].set(
        params["w3"].astype(bf16))

    wmu = jnp.zeros((hidden, act_pad), bf16).at[:, :act_dim].set(
        params["wmu"].astype(bf16))

    bstack = jnp.zeros((4, bias_w), jnp.float32)
    bstack = bstack.at[0, :hidden].set(params["b1"].reshape(-1))
    bstack = bstack.at[1, :hidden].set(params["b2"].reshape(-1))
    bstack = bstack.at[2, :hidden].set(params["b3"].reshape(-1))
    bstack = bstack.at[3, :act_dim].set(params["bmu"].reshape(-1))

    return dict(wstack=wstack, wmu=wmu, bstack=bstack,
                obs_dim=obs_dim, obs_pad=obs_pad, hidden=hidden,
                act_dim=act_dim, act_pad=act_pad)


def _pick_tb(B, max_tb=512):
    """Generation-aware batch tile: one big tile on 1-TC chips (v5e/v6e),
    >=2 tiles on v7x so both TensorCores get work."""
    b8 = _round_up(max(B, 1), 8)
    try:
        kind = jax.devices()[0].device_kind.lower()
    except Exception:  # pragma: no cover - fallback when device query fails
        kind = ""
    two_tc = ("v7" in kind) or ("7x" in kind)
    if two_tc and b8 > 8:
        tb = min(max_tb, _round_up(pl.cdiv(b8, 2), 8))
    else:
        tb = min(max_tb, b8)
    return tb


# ---------------------------------------------------------------------------
# Forward wrapper
# ---------------------------------------------------------------------------
def actor_forward(x, packed, out_dtype=jnp.float32):
    """x: (B, obs_dim) f32.  packed: output of prepare_actor_params."""
    B, obs_dim = x.shape
    assert obs_dim == packed["obs_dim"]
    obs_pad = packed["obs_pad"]
    hidden = packed["hidden"]
    act_dim = packed["act_dim"]
    act_pad = packed["act_pad"]

    tb = _pick_tb(B)
    b_pad = _round_up(B, tb)

    if (b_pad, obs_pad) == (B, obs_dim):
        xp = x
    else:
        xp = jnp.zeros((b_pad, obs_pad), jnp.float32).at[:B, :obs_dim].set(x)

    wstack, wmu, bstack = packed["wstack"], packed["wmu"], packed["bstack"]

    flops = 2 * b_pad * (obs_pad * hidden + 2 * hidden * hidden + hidden * act_pad)
    bytes_accessed = (b_pad * obs_pad * 4 + wstack.size * 2 + wmu.size * 2
                      + bstack.size * 4
                      + b_pad * act_pad * jnp.dtype(out_dtype).itemsize)

    kernel = functools.partial(actor_kernel, obs_pad=obs_pad,
                               hidden=hidden, act_pad=act_pad)

    def resident(a):
        # Whole array, same block every grid step -> stays VMEM-resident.
        return pl.BlockSpec(a.shape, lambda i: (0, 0))

    out = pl.pallas_call(
        kernel,
        out_shape=jax.ShapeDtypeStruct((b_pad, act_pad), out_dtype),
        grid_spec=pltpu.PrefetchScalarGridSpec(
            num_scalar_prefetch=0,
            grid=(b_pad // tb,),
            in_specs=[pl.BlockSpec((tb, obs_pad), lambda i: (i, 0)),
                      resident(wstack),
                      resident(wmu),
                      resident(bstack)],
            out_specs=pl.BlockSpec((tb, act_pad), lambda i: (i, 0)),
        ),
        compiler_params=pltpu.CompilerParams(
            dimension_semantics=("parallel",),
        ),
        cost_estimate=pl.CostEstimate(
            flops=flops,
            transcendentals=b_pad * act_pad,
            bytes_accessed=bytes_accessed),
    )(xp, wstack, wmu, bstack)

    return out[:B, :act_dim]


# ---------------------------------------------------------------------------
# Param init + references
# ---------------------------------------------------------------------------
def init_actor_params(key, obs_dim, act_dim, hidden=256):
    """PyTorch-style init: U(-1/sqrt(fan_in), 1/sqrt(fan_in)).
    Weights stored as (in, out); biases as (1, out)."""
    def linear(key, fan_in, fan_out):
        kw, kb = jax.random.split(key)
        bound = 1.0 / jnp.sqrt(jnp.float32(fan_in))
        w = jax.random.uniform(kw, (fan_in, fan_out), jnp.float32, -bound, bound)
        b = jax.random.uniform(kb, (1, fan_out), jnp.float32, -bound, bound)
        return w, b

    k1, k2, k3, k4 = jax.random.split(key, 4)
    w1, b1 = linear(k1, obs_dim, hidden)
    w2, b2 = linear(k2, hidden, hidden)
    w3, b3 = linear(k3, hidden, hidden)
    wmu, bmu = linear(k4, hidden, act_dim)
    return dict(w1=w1, b1=b1, w2=w2, b2=b2, w3=w3, b3=b3, wmu=wmu, bmu=bmu)


def actor_reference_f32(x, p):
    """Pure-f32 reference (original module semantics)."""
    h = jax.nn.relu(x @ p["w1"] + p["b1"])
    h = jax.nn.relu(h @ p["w2"] + p["b2"])
    h = jax.nn.relu(h @ p["w3"] + p["b3"])
    return jnp.tanh(h @ p["wmu"] + p["bmu"])


def actor_reference_matched(x, p):
    """Reference mirroring kernel numerics: bf16 dot inputs, f32 accumulation."""
    bf16 = jnp.bfloat16

    def lin(h, w, b):
        return jnp.dot(h.astype(bf16), w.astype(bf16),
                       preferred_element_type=jnp.float32) + b

    h = jax.nn.relu(lin(x, p["w1"], p["b1"]))
    h = jax.nn.relu(lin(h, p["w2"], p["b2"]))
    h = jax.nn.relu(lin(h, p["w3"], p["b3"]))
    return jnp.tanh(lin(h, p["wmu"], p["bmu"]))


if __name__ == "__main__":
    key = jax.random.PRNGKey(0)
    k_params, k_x = jax.random.split(key)

    B, OBS_DIM, ACT_DIM = 256, 16, 4
    params = init_actor_params(k_params, OBS_DIM, ACT_DIM)
    packed = prepare_actor_params(params)          # one-time param prep
    x = jax.random.normal(k_x, (B, OBS_DIM), jnp.float32)

    fwd = jax.jit(lambda xx: actor_forward(xx, packed))
    out = jax.block_until_ready(fwd(x))
    assert out.shape == (B, ACT_DIM)

    # Exact semantics check against a reference with matching bf16-dot numerics.
    ref_matched = actor_reference_matched(x, params)
    assert jnp.allclose(out, ref_matched, atol=2e-3, rtol=2e-3), \
        "mismatch vs bf16-matched reference"

    # Sanity check against the full-f32 original-module semantics
    # (bf16 weights are an intentional precision tradeoff).
    ref_f32 = actor_reference_f32(x, params)
    assert jnp.allclose(out, ref_f32, atol=5e-2, rtol=5e-2), \
        "mismatch vs f32 reference"

    print("KERNEL_OK")
</pallas_src>

<mosaic_0001>
module attributes {stable_mosaic.version = 11 : i64} {
  func.func @actor_kernel(%arg0: i32, %arg1: memref<256x128xf32, #tpu.memory_space<vmem>>, %arg2: memref<640x256xbf16, #tpu.memory_space<vmem>>, %arg3: memref<256x128xbf16, #tpu.memory_space<vmem>>, %arg4: memref<4x256xf32, #tpu.memory_space<vmem>>, %arg5: memref<256x128xf32, #tpu.memory_space<vmem>>) attributes {dimension_semantics = [#tpu.dimension_semantics<parallel>], iteration_bounds = array<i64: 1>, scalar_prefetch = 0 : i64, scratch_operands = 0 : i64, tpu.core_type = #tpu.core_type<tc>, window_params = [{transform_indices = @transform_0, window_bounds = array<i64: 256, 128>}, {pipeline_mode = #tpu.pipeline_mode<synchronous>, transform_indices = @transform_1, window_bounds = array<i64: 640, 256>}, {pipeline_mode = #tpu.pipeline_mode<synchronous>, transform_indices = @transform_2, window_bounds = array<i64: 256, 128>}, {pipeline_mode = #tpu.pipeline_mode<synchronous>, transform_indices = @transform_3, window_bounds = array<i64: 4, 256>}, {transform_indices = @transform_4, window_bounds = array<i64: 256, 128>}]} {
    %c0 = arith.constant 0 : index
    %c0_0 = arith.constant 0 : index
    %0 = vector.load %arg2[%c0, %c0_0] : memref<640x256xbf16, #tpu.memory_space<vmem>>, vector<128x256xbf16>
    %c128 = arith.constant 128 : index
    %c0_1 = arith.constant 0 : index
    %1 = vector.load %arg2[%c128, %c0_1] : memref<640x256xbf16, #tpu.memory_space<vmem>>, vector<256x256xbf16>
    %c384 = arith.constant 384 : index
    %c0_2 = arith.constant 0 : index
    %2 = vector.load %arg2[%c384, %c0_2] : memref<640x256xbf16, #tpu.memory_space<vmem>>, vector<256x256xbf16>
    %c0_3 = arith.constant 0 : index
    %c0_4 = arith.constant 0 : index
    %3 = vector.load %arg4[%c0_3, %c0_4] : memref<4x256xf32, #tpu.memory_space<vmem>>, vector<1x256xf32>
    %c1 = arith.constant 1 : index
    %c0_5 = arith.constant 0 : index
    %4 = vector.load %arg4[%c1, %c0_5] : memref<4x256xf32, #tpu.memory_space<vmem>>, vector<1x256xf32>
    %c2 = arith.constant 2 : index
    %c0_6 = arith.constant 0 : index
    %5 = vector.load %arg4[%c2, %c0_6] : memref<4x256xf32, #tpu.memory_space<vmem>>, vector<1x256xf32>
    %c3 = arith.constant 3 : index
    %c0_7 = arith.constant 0 : index
    %6 = vector.load %arg4[%c3, %c0_7] : memref<4x256xf32, #tpu.memory_space<vmem>>, vector<1x128xf32>
    %c0_8 = arith.constant 0 : index
    %c0_9 = arith.constant 0 : index
    %7 = vector.load %arg1[%c0_8, %c0_9] : memref<256x128xf32, #tpu.memory_space<vmem>>, vector<256x128xf32>
    %8 = arith.truncf %7 : vector<256x128xf32> to vector<256x128xbf16>
    %cst = arith.constant dense<0.000000e+00> : vector<256x256xf32>
    %9 = tpu.matmul %8, %0, %cst {dimension_numbers = #tpu.dot_dimension_numbers<[1], [0], [0], [1], [0, 0, 1, 1], [], []>} : vector<256x128xbf16>, vector<128x256xbf16>, vector<256x256xf32> -> vector<256x256xf32>
    %10 = vector.broadcast %3 : vector<1x256xf32> to vector<256x256xf32>
    %11 = arith.addf %9, %10 : vector<256x256xf32>
    %cst_10 = arith.constant 0.000000e+00 : f32
    %12 = vector.broadcast %cst_10 : f32 to vector<256x256xf32>
    %13 = arith.maximumf %11, %12 : vector<256x256xf32>
    %14 = arith.truncf %13 : vector<256x256xf32> to vector<256x256xbf16>
    %cst_11 = arith.constant dense<0.000000e+00> : vector<256x256xf32>
    %15 = tpu.matmul %14, %1, %cst_11 {dimension_numbers = #tpu.dot_dimension_numbers<[1], [0], [0], [1], [0, 0, 1, 1], [], []>} : vector<256x256xbf16>, vector<256x256xbf16>, vector<256x256xf32> -> vector<256x256xf32>
    %16 = vector.broadcast %4 : vector<1x256xf32> to vector<256x256xf32>
    %17 = arith.addf %15, %16 : vector<256x256xf32>
    %cst_12 = arith.constant 0.000000e+00 : f32
    %18 = vector.broadcast %cst_12 : f32 to vector<256x256xf32>
    %19 = arith.maximumf %17, %18 : vector<256x256xf32>
    %20 = arith.truncf %19 : vector<256x256xf32> to vector<256x256xbf16>
    %cst_13 = arith.constant dense<0.000000e+00> : vector<256x256xf32>
    %21 = tpu.matmul %20, %2, %cst_13 {dimension_numbers = #tpu.dot_dimension_numbers<[1], [0], [0], [1], [0, 0, 1, 1], [], []>} : vector<256x256xbf16>, vector<256x256xbf16>, vector<256x256xf32> -> vector<256x256xf32>
    %22 = vector.broadcast %5 : vector<1x256xf32> to vector<256x256xf32>
    %23 = arith.addf %21, %22 : vector<256x256xf32>
    %cst_14 = arith.constant 0.000000e+00 : f32
    %24 = vector.broadcast %cst_14 : f32 to vector<256x256xf32>
    %25 = arith.maximumf %23, %24 : vector<256x256xf32>
    %26 = arith.truncf %25 : vector<256x256xf32> to vector<256x256xbf16>
    %c0_15 = arith.constant 0 : index
    %c0_16 = arith.constant 0 : index
    %27 = vector.load %arg3[%c0_15, %c0_16] : memref<256x128xbf16, #tpu.memory_space<vmem>>, vector<256x128xbf16>
    %cst_17 = arith.constant dense<0.000000e+00> : vector<256x128xf32>
    %28 = tpu.matmul %26, %27, %cst_17 {dimension_numbers = #tpu.dot_dimension_numbers<[1], [0], [0], [1], [0, 0, 1, 1], [], []>} : vector<256x256xbf16>, vector<256x128xbf16>, vector<256x128xf32> -> vector<256x128xf32>
    %29 = vector.broadcast %6 : vector<1x128xf32> to vector<256x128xf32>
    %30 = arith.addf %28, %29 : vector<256x128xf32>
    %31 = math.tanh %30 : vector<256x128xf32>
    %c0_18 = arith.constant 0 : index
    %c0_19 = arith.constant 0 : index
    %32 = vector.load %arg5[%c0_18, %c0_19] : memref<256x128xf32, #tpu.memory_space<vmem>>, vector<256x128xf32>
    tpu.vector_store %arg5[%c0_18, %c0_19], %31 {strides = array<i32>} : memref<256x128xf32, #tpu.memory_space<vmem>>, vector<256x128xf32>,
    return
  }
  func.func @transform_0(%arg0: i32) -> (i32, i32) {
    %c0_i32 = arith.constant 0 : i32
    %c0_i32_0 = arith.constant 0 : i32
    return %arg0, %c0_i32 : i32, i32
  }
  func.func @transform_1(%arg0: i32) -> (i32, i32) {
    %c0_i32 = arith.constant 0 : i32
    %c0_i32_0 = arith.constant 0 : i32
    %c0_i32_1 = arith.constant 0 : i32
    return %c0_i32, %c0_i32_0 : i32, i32
  }
  func.func @transform_2(%arg0: i32) -> (i32, i32) {
    %c0_i32 = arith.constant 0 : i32
    %c0_i32_0 = arith.constant 0 : i32
    %c0_i32_1 = arith.constant 0 : i32
    return %c0_i32, %c0_i32_0 : i32, i32
  }
  func.func @transform_3(%arg0: i32) -> (i32, i32) {
    %c0_i32 = arith.constant 0 : i32
    %c0_i32_0 = arith.constant 0 : i32
    %c0_i32_1 = arith.constant 0 : i32
    return %c0_i32, %c0_i32_0 : i32, i32
  }
  func.func @transform_4(%arg0: i32) -> (i32, i32) {
    %c0_i32 = arith.constant 0 : i32
    %c0_i32_0 = arith.constant 0 : i32
    return %arg0, %c0_i32 : i32, i32
  }
}

</mosaic_0001>

<bundles_post_ra>
// kernel: _lambda_.1
= control target key start
LH: loop header
LB: loop body
LE: loop exit
PB: predicated region body
PF: predicated region fallthrough
CT: control target
= control target key end

     0   :  { %s3973_s1 = inlined_call_operand.vmem [shape: bf16[640,256], index: 1, kind: input, shape index: {}]   ;;  %s3974_s3 = inlined_call_operand.vmem [shape: f32[4,256], index: 3, kind: input, shape index: {}]   ;;  %s3975_s0 = inlined_call_operand.vmem [shape: f32[256,128], index: 0, kind: input, shape index: {}]   ;;  %s3976_s2 = inlined_call_operand.vmem [shape: bf16[256,128], index: 2, kind: input, shape index: {}]   ;;  %s3977_s4 = inlined_call_operand.vmem [shape: f32[256,128], index: 4, kind: output, shape index: {}]  }
   0x1   :  { %v2179_v0 = vld [vmem:[%s3973_s1 + $0x70] sm:$0xf]  ;;  %v2520_v1 = vld [vmem:[%s3973_s1 + $0x74] sm:$0xf0]  ;;  %v2519_v2 = vld [vmem:[%s3973_s1 + $0x74] sm:$0xf] }
   0x2   :  { %v2180_v3 = vor.u32 %v2520_v1, %v2179_v0  ;;  %v2181_v4 = vld [vmem:[%s3973_s1 + $0x78] sm:$0xf0]  ;;  %v2171_v5 = vld [vmem:[%s3973_s1 + $0x60] sm:$0xf]  ;;  %v2518_v6 = vld [vmem:[%s3973_s1 + $0x64] sm:$0xf0] }
   0x3   :  { %v2184_v7 = vor.u32 %v2519_v2, %v2181_v4  ;;  %v2517_v8 = vld [vmem:[%s3973_s1 + $0x64] sm:$0xf]  ;;  %v2173_v9 = vld [vmem:[%s3973_s1 + $0x68] sm:$0xf0]  ;;  %v2172_v10 = vor.u32 %v2518_v6, %v2171_v5  ;;  %v2163_v12 = vld [vmem:[%s3973_s1 + $0x50] sm:$0xf] }
   0x4   :  { %236 = vmatpush.bf16.msra.mxu0 %v2180_v3  ;;  %v2176_v11 = vor.u32 %v2517_v8, %v2173_v9  ;;  %v2516_v13 = vld [vmem:[%s3973_s1 + $0x54] sm:$0xf0]  ;;  %v2515_v14 = vld [vmem:[%s3973_s1 + $0x54] sm:$0xf]  ;;  %v2165_v15 = vld [vmem:[%s3973_s1 + $0x58] sm:$0xf0] }
   0x5   :  { %325 = vmatpush.bf16.msra.mxu1 %v2184_v7  ;;  %v2164_v16 = vor.u32 %v2516_v13, %v2163_v12  ;;  %v2168_v17 = vor.u32 %v2515_v14, %v2165_v15  ;;  %v2155_v18 = vld [vmem:[%s3973_s1 + $0x40] sm:$0xf]  ;;  %v2514_v19 = vld [vmem:[%s3973_s1 + $0x44] sm:$0xf0]  ;;  %v2513_v20 = vld [vmem:[%s3973_s1 + $0x44] sm:$0xf] }
   0x6   :  { %v2157_v21 = vld [vmem:[%s3973_s1 + $0x48] sm:$0xf0]  ;;  %v2156_v22 = vor.u32 %v2514_v19, %v2155_v18  ;;  %v2147_v24 = vld [vmem:[%s3973_s1 + $0x30] sm:$0xf]  ;;  %v2512_v25 = vld [vmem:[%s3973_s1 + $0x34] sm:$0xf0] }
   0x7   :  { %v2160_v23 = vor.u32 %v2513_v20, %v2157_v21  ;;  %v2511_v26 = vld [vmem:[%s3973_s1 + $0x34] sm:$0xf]  ;;  %v2149_v27 = vld [vmem:[%s3973_s1 + $0x38] sm:$0xf0]  ;;  %v2148_v28 = vor.u32 %v2512_v25, %v2147_v24  ;;  %v2139_v30 = vld [vmem:[%s3973_s1 + $0x20] sm:$0xf] }
   0x8   :  { %237 = vmatpush.bf16.msra.mxu0 %v2172_v10  ;;  %v2152_v29 = vor.u32 %v2511_v26, %v2149_v27  ;;  %v2510_v31 = vld [vmem:[%s3973_s1 + $0x24] sm:$0xf0]  ;;  %v2509_v32 = vld [vmem:[%s3973_s1 + $0x24] sm:$0xf]  ;;  %v2141_v33 = vld [vmem:[%s3973_s1 + $0x28] sm:$0xf0] }
   0x9   :  { %326 = vmatpush.bf16.msra.mxu1 %v2176_v11  ;;  %v2140_v34 = vor.u32 %v2510_v31, %v2139_v30  ;;  %v2144_v35 = vor.u32 %v2509_v32, %v2141_v33  ;;  %v2131_v36 = vld [vmem:[%s3973_s1 + $0x10] sm:$0xf]  ;;  %v2508_v37 = vld [vmem:[%s3973_s1 + $0x14] sm:$0xf0]  ;;  %v2507_v38 = vld [vmem:[%s3973_s1 + $0x14] sm:$0xf] }
   0xa   :  { %v2133_v39 = vld [vmem:[%s3973_s1 + $0x18] sm:$0xf0]  ;;  %v2132_v40 = vor.u32 %v2508_v37, %v2131_v36  ;;  %v2123_v42 = vld [vmem:[%s3973_s1] sm:$0xf]  ;;  %v2506_v43 = vld [vmem:[%s3973_s1 + $0x4] sm:$0xf0] }
   0xb   :  { %v2136_v41 = vor.u32 %v2507_v38, %v2133_v39  ;;  %v2505_v44 = vld [vmem:[%s3973_s1 + $0x4] sm:$0xf]  ;;  %v2125_v45 = vld [vmem:[%s3973_s1 + $0x8] sm:$0xf0]  ;;  %v2535_v46 = vld [vmem:[%s3973_s1 + $0xf4] sm:$0xf]  ;;  %v2124_v50 = vor.u32 %v2506_v43, %v2123_v42 }
   0xc   :  { %238 = vmatpush.bf16.msra.mxu0 %v2164_v16  ;;  %v2245_v47 = vld [vmem:[%s3973_s1 + $0xf8] sm:$0xf0]  ;;  %v2551_v48 = vld [vmem:[%s3973_s1 + $0x174] sm:$0xf]  ;;  %v103_v51 = vld [vmem:[%s3975_s0] sm:$0xff]  ;;  %v2128_v53 = vor.u32 %v2505_v44, %v2125_v45 }
   0xd   :  { %327 = vmatpush.bf16.msra.mxu1 %v2168_v17  ;;  %v2309_v49 = vld [vmem:[%s3973_s1 + $0x178] sm:$0xf0]  ;;  %v104_v52 = vld [vmem:[%s3975_s0 + $0x8] sm:$0xff]  ;;  %v2248_v54 = vor.u32 %v2535_v46, %v2245_v47  ;;  %v2533_v57 = vld [vmem:[%s3973_s1 + $0xe4] sm:$0xf] }
   0xe   :  { %v2312_v55 = vor.u32 %v2551_v48, %v2309_v49  ;;  %v135_v56 = vpack.c.bf16 %v104_v52, %v103_v51  ;;  %v2237_v58 = vld [vmem:[%s3973_s1 + $0xe8] sm:$0xf0]  ;;  %v2549_v59 = vld [vmem:[%s3973_s1 + $0x164] sm:$0xf]  ;;  %v105_v63 = vld [vmem:[%s3975_s0 + $0x10] sm:$0xff] }
   0xf   :  { %v2240_v60 = vor.u32 %v2533_v57, %v2237_v58  ;;  %v2301_v61 = vld [vmem:[%s3973_s1 + $0x168] sm:$0xf0]  ;;  %v106_v0 = vld [vmem:[%s3975_s0 + $0x18] sm:$0xff]  ;;  %v107_v2 = vld [vmem:[%s3975_s0 + $0x20] sm:$0xff] }
  0x10   :  { %239 = vmatpush.bf16.msra.mxu0 %v2156_v22  ;;  %v2304_v62 = vor.u32 %v2549_v59, %v2301_v61  ;;  %v136_v1 = vpack.c.bf16 %v106_v0, %v105_v63  ;;  %v108_v3 = vld [vmem:[%s3975_s0 + $0x28] sm:$0xff]  ;;  %v2531_v5 = vld [vmem:[%s3973_s1 + $0xd4] sm:$0xf]  ;;  %v2229_v6 = vld [vmem:[%s3973_s1 + $0xd8] sm:$0xf0] }
  0x11   :  { %328 = vmatpush.bf16.msra.mxu1 %v2160_v23  ;;  %v137_v4 = vpack.c.bf16 %v108_v3, %v107_v2  ;;  %v2547_v7 = vld [vmem:[%s3973_s1 + $0x154] sm:$0xf]  ;;  %v2232_v8 = vor.u32 %v2531_v5, %v2229_v6  ;;  %v2293_v9 = vld [vmem:[%s3973_s1 + $0x158] sm:$0xf0]  ;;  %v111_v14 = vld [vmem:[%s3975_s0 + $0x40] sm:$0xff] }
  0x12   :  { %v2296_v10 = vor.u32 %v2547_v7, %v2293_v9  ;;  %v109_v11 = vld [vmem:[%s3975_s0 + $0x30] sm:$0xff]  ;;  %v110_v12 = vld [vmem:[%s3975_s0 + $0x38] sm:$0xff]  ;;  %v112_v15 = vld [vmem:[%s3975_s0 + $0x48] sm:$0xff] }
  0x13   :  { %v138_v13 = vpack.c.bf16 %v110_v12, %v109_v11  ;;  %v139_v16 = vpack.c.bf16 %v112_v15, %v111_v14  ;;  %v2529_v17 = vld [vmem:[%s3973_s1 + $0xc4] sm:$0xf]  ;;  %v2221_v18 = vld [vmem:[%s3973_s1 + $0xc8] sm:$0xf0]  ;;  %v2243_v22 = vld [vmem:[%s3973_s1 + $0xf0] sm:$0xf] }
  0x14   :  { %240 = vmatpush.bf16.msra.mxu0 %v2148_v28  ;;  %v2545_v19 = vld [vmem:[%s3973_s1 + $0x144] sm:$0xf]  ;;  %v2224_v20 = vor.u32 %v2529_v17, %v2221_v18  ;;  %v2285_v21 = vld [vmem:[%s3973_s1 + $0x148] sm:$0xf0]  ;;  %v2536_v23 = vld [vmem:[%s3973_s1 + $0xf4] sm:$0xf0] }
  0x15   :  { %329 = vmatpush.bf16.msra.mxu1 %v2152_v29  ;;  %v2288_v24 = vor.u32 %v2545_v19, %v2285_v21  ;;  %v2244_v25 = vor.u32 %v2536_v23, %v2243_v22  ;;  %v2307_v26 = vld [vmem:[%s3973_s1 + $0x170] sm:$0xf]  ;;  %v2552_v27 = vld [vmem:[%s3973_s1 + $0x174] sm:$0xf0]  ;;  %v2235_v32 = vld [vmem:[%s3973_s1 + $0xe0] sm:$0xf] }
  0x16   :  { %v2308_v28 = vor.u32 %v2552_v27, %v2307_v26  ;;  %v113_v29 = vld [vmem:[%s3975_s0 + $0x50] sm:$0xff]  ;;  %v114_v30 = vld [vmem:[%s3975_s0 + $0x58] sm:$0xff]  ;;  %v2534_v33 = vld [vmem:[%s3973_s1 + $0xe4] sm:$0xf0] }
  0x17   :  { %675 = vmatpush.bf16.msra.mxu2 %v2244_v25  ;;  %v140_v31 = vpack.c.bf16 %v114_v30, %v113_v29  ;;  %v2550_v36 = vld [vmem:[%s3973_s1 + $0x164] sm:$0xf0]  ;;  %v2227_v38 = vld [vmem:[%s3973_s1 + $0xd0] sm:$0xf]  ;;  %v2532_v39 = vld [vmem:[%s3973_s1 + $0xd4] sm:$0xf0] }
  0x18   :  { %241 = vmatpush.bf16.msra.mxu0 %v2140_v34  ;;  %764 = vmatpush.bf16.msra.mxu3 %v2308_v28  ;;  %v2299_v34 = vld [vmem:[%s3973_s1 + $0x160] sm:$0xf]  ;;  %v2548_v42 = vld [vmem:[%s3973_s1 + $0x154] sm:$0xf0]  ;;  %v2530_v45 = vld [vmem:[%s3973_s1 + $0xc4] sm:$0xf0] }
  0x19   :  { %330 = vmatpush.bf16.msra.mxu1 %v2144_v35  ;;  %v2236_v35 = vor.u32 %v2534_v33, %v2235_v32  ;;  %v2300_v37 = vor.u32 %v2550_v36, %v2299_v34  ;;  %v2219_v44 = vld [vmem:[%s3973_s1 + $0xc0] sm:$0xf]  ;;  %v2546_v47 = vld [vmem:[%s3973_s1 + $0x144] sm:$0xf0]  ;;  %v2211_v52 = vld [vmem:[%s3973_s1 + $0xb0] sm:$0xf] }
  0x1a   :  { %v2283_v46 = vld [vmem:[%s3973_s1 + $0x140] sm:$0xf]  ;;  %v2220_v48 = vor.u32 %v2530_v45, %v2219_v44  ;;  %v116_v51 = vld [vmem:[%s3975_s0 + $0x68] sm:$0xff]  ;;  %v2544_v57 = vld [vmem:[%s3973_s1 + $0x134] sm:$0xf0] }
  0x1b   :  { %676 = vmatpush.bf16.msra.mxu2 %v2236_v35  ;;  %v2284_v49 = vor.u32 %v2546_v47, %v2283_v46  ;;  %v2203_v59 = vld [vmem:[%s3973_s1 + $0xa0] sm:$0xf]  ;;  %v2542_v63 = vld [vmem:[%s3973_s1 + $0x124] sm:$0xf0]  ;;  %v2527_v0 = vld [vmem:[%s3973_s1 + $0xb4] sm:$0xf] }
  0x1c   :  { %242 = vmatpush.bf16.msra.mxu0 %v2132_v40  ;;  %v2291_v40 = vld [vmem:[%s3973_s1 + $0x150] sm:$0xf]  ;;  %765 = vmatpush.bf16.msra.mxu3 %v2300_v37  ;;  %v2543_v3 = vld [vmem:[%s3973_s1 + $0x134] sm:$0xf]  ;;  %v2277_v5 = vld [vmem:[%s3973_s1 + $0x138] sm:$0xf0] }
  0x1d   :  { %331 = vmatpush.bf16.msra.mxu1 %v2136_v41  ;;  %v2228_v41 = vor.u32 %v2532_v39, %v2227_v38  ;;  %v2292_v43 = vor.u32 %v2548_v42, %v2291_v40  ;;  %v2280_v6 = vor.u32 %v2543_v3, %v2277_v5  ;;  %v2195_v7 = vld [vmem:[%s3973_s1 + $0x90] sm:$0xf]  ;;  %v2540_v11 = vld [vmem:[%s3973_s1 + $0x114] sm:$0xf0]  ;;  %v2522_v14 = vld [vmem:[%s3973_s1 + $0x84] sm:$0xf0] }
  0x1e   :  { %v2259_v9 = vld [vmem:[%s3973_s1 + $0x110] sm:$0xf]  ;;  %v2251_v15 = vld [vmem:[%s3973_s1 + $0x100] sm:$0xf]  ;;  %v2538_v17 = vld [vmem:[%s3973_s1 + $0x104] sm:$0xf0] }
  0x1f   :  { %677 = vmatpush.bf16.msra.mxu2 %v2228_v41  ;;  %v2260_v12 = vor.u32 %v2540_v11, %v2259_v9  ;;  %v117_v18 = vld [vmem:[%s3975_s0 + $0x70] sm:$0xff]  ;;  %v118_v19 = vld [vmem:[%s3975_s0 + $0x78] sm:$0xff]  ;;  %v119_v28 = vld [vmem:[%s3975_s0 + $0x80] sm:$0xff] }
  0x20   :  { %243 = vmatpush.bf16.msra.mxu0 %v2124_v50  ;;  %766 = vmatpush.bf16.msra.mxu3 %v2292_v43  ;;  %v115_v50 = vld [vmem:[%s3975_s0 + $0x60] sm:$0xff]  ;;  %v142_v21 = vpack.c.bf16 %v118_v19, %v117_v18  ;;  %v2371_v22 = vld [vmem:[%s3973_s1 + $0x1f0] sm:$0xf]  ;;  %v2568_v23 = vld [vmem:[%s3973_s1 + $0x1f4] sm:$0xf0] }
  0x21   :  { %332 = vmatpush.bf16.msra.mxu1 %v2128_v53  ;;  %v2528_v53 = vld [vmem:[%s3973_s1 + $0xb4] sm:$0xf0]  ;;  %v2435_v25 = vld [vmem:[%s3973_s1 + $0x270] sm:$0xf]  ;;  %v120_v29 = vld [vmem:[%s3975_s0 + $0x88] sm:$0xff] }
  0x22   :  { %v2584_v26 = vld [vmem:[%s3973_s1 + $0x274] sm:$0xf0]  ;;  %v143_v30 = vpack.c.bf16 %v120_v29, %v119_v28  ;;  %v2525_v36 = vld [vmem:[%s3973_s1 + $0xa4] sm:$0xf]  ;;  %v2205_v37 = vld [vmem:[%s3973_s1 + $0xa8] sm:$0xf0] }
  0x23   :  { %244 = vmatmul.bf16.vlgmr.msra.gmra.mxu0 %v135_v56  ;;  %678 = vmatpush.bf16.msra.mxu2 %v2220_v48  ;;  %v2436_v27 = vor.u32 %v2584_v26, %v2435_v25  ;;  %v2208_v38 = vor.u32 %v2525_v36, %v2205_v37  ;;  %v2541_v39 = vld [vmem:[%s3973_s1 + $0x124] sm:$0xf]  ;;  %v2269_v40 = vld [vmem:[%s3973_s1 + $0x128] sm:$0xf0]  ;;  %v2523_v18 = vld [vmem:[%s3973_s1 + $0x94] sm:$0xf] }
  0x24   :  { %853 = vmatpush.bf16.msrb.mxu0 %v2248_v54  ;;  %333 = vmatmul.bf16.vlgmr.msra.gmra.mxu1 %v135_v56  ;;  %v2275_v54 = vld [vmem:[%s3973_s1 + $0x130] sm:$0xf]  ;;  %v2212_v56 = vor.u32 %v2528_v53, %v2211_v52  ;;  %v2272_v41 = vor.u32 %v2541_v39, %v2269_v40  ;;  %v122_v53 = vld [vmem:[%s3975_s0 + $0x98] sm:$0xff]  ;;  %v123_v11 = vld [vmem:[%s3975_s0 + $0xa0] sm:$0xff] }
  0x25   :  { %942 = vmatpush.bf16.msrb.mxu1 %v2312_v55  ;;  %767 = vmatpush.bf16.msra.mxu3 %v2284_v49  ;;  %v141_v55 = vpack.c.bf16 %v116_v51, %v115_v50  ;;  %v2276_v58 = vor.u32 %v2544_v57, %v2275_v54  ;;  %v121_v52 = vld [vmem:[%s3975_s0 + $0x90] sm:$0xff]  ;;  %v2197_v19 = vld [vmem:[%s3973_s1 + $0x98] sm:$0xf0] }
  0x26   :  { %v125_v36 = vld [vmem:[%s3975_s0 + $0xb0] sm:$0xff]  ;;  %v126_v37 = vld [vmem:[%s3975_s0 + $0xb8] sm:$0xff] }
  0x27   :  { %679 = vmatpush.bf16.msra.mxu2 %v2212_v56  ;;  %v144_v56 = vpack.c.bf16 %v122_v53, %v121_v52  ;;  %v146_v40 = vpack.c.bf16 %v126_v37, %v125_v36 }
  0x28   :  { %854 = vmatpush.bf16.msrb.mxu0 %v2240_v60  ;;  %v2526_v60 = vld [vmem:[%s3973_s1 + $0xa4] sm:$0xf0] }
  0x29   :  { %943 = vmatpush.bf16.msrb.mxu1 %v2304_v62  ;;  %768 = vmatpush.bf16.msra.mxu3 %v2276_v58  ;;  %v2204_v61 = vor.u32 %v2526_v60, %v2203_v59  ;;  %v2267_v62 = vld [vmem:[%s3973_s1 + $0x120] sm:$0xf]  ;;  %v2566_v59 = vld [vmem:[%s3973_s1 + $0x1e4] sm:$0xf0] }
  0x2a   :  { %v2268_v2 = vor.u32 %v2542_v63, %v2267_v62  ;;  %v2363_v58 = vld [vmem:[%s3973_s1 + $0x1e0] sm:$0xf]  ;;  %v2582_v63 = vld [vmem:[%s3973_s1 + $0x264] sm:$0xf0] }
  0x2b   :  { %680 = vmatpush.bf16.msra.mxu2 %v2204_v61  ;;  %v2364_v61 = vor.u32 %v2566_v59, %v2363_v58  ;;  %v2427_v62 = vld [vmem:[%s3973_s1 + $0x260] sm:$0xf] }
  0x2c   :  { %855 = vmatpush.bf16.msrb.mxu0 %v2232_v8  ;;  %v2524_v8 = vld [vmem:[%s3973_s1 + $0x94] sm:$0xf0] }
  0x2d   :  { %944 = vmatpush.bf16.msrb.mxu1 %v2296_v10  ;;  %769 = vmatpush.bf16.msra.mxu3 %v2268_v2  ;;  %v2196_v10 = vor.u32 %v2524_v8, %v2195_v7 }
  0x2f   :  { %681 = vmatpush.bf16.msra.mxu2 %v2196_v10 }
  0x30   :  { %856 = vmatpush.bf16.msrb.mxu0 %v2224_v20  ;;  %v2252_v20 = vor.u32 %v2538_v17, %v2251_v15 }
  0x31   :  { %945 = vmatpush.bf16.msrb.mxu1 %v2288_v24  ;;  %770 = vmatpush.bf16.msra.mxu3 %v2260_v12  ;;  %v2372_v24 = vor.u32 %v2568_v23, %v2371_v22  ;;  %v124_v12 = vld [vmem:[%s3975_s0 + $0xa8] sm:$0xff]  ;;  %v2261_v22 = vld [vmem:[%s3973_s1 + $0x118] sm:$0xf0] }
  0x32   :  { %v145_v15 = vpack.c.bf16 %v124_v12, %v123_v11 }
  0x33   :  { %249 = vmatmul.bf16.gmra.mxu0 %v136_v1 }
  0x34   :  { %338 = vmatmul.bf16.gmra.mxu1 %v136_v1  ;;  %v2213_v1 = vld [vmem:[%s3973_s1 + $0xb8] sm:$0xf0] }
  0x35   :  { %946 = vmatpush.bf16.msrb.mxu1 %v2280_v6  ;;  %771 = vmatpush.bf16.msra.mxu3 %v2252_v20  ;;  %v2200_v20 = vor.u32 %v2523_v18, %v2197_v19 }
  0x39   :  { %1381 = vmatpush.bf16.msrb.mxu3 %v2436_v27  ;;  %947 = vmatpush.bf16.msrb.mxu1 %v2272_v41 }
  0x43   :  { %254 = vmatmul.bf16.gmra.mxu0 %v137_v4 }
  0x44   :  { %343 = vmatmul.bf16.gmra.mxu1 %v137_v4  ;;  %v2216_v4 = vor.u32 %v2527_v0, %v2213_v1  ;;  %v2428_v0 = vor.u32 %v2582_v63, %v2427_v62  ;;  %v128_v62 = vld [vmem:[%s3975_s0 + $0xc8] sm:$0xff] }
  0x46   :  { %857 = vmatpush.bf16.msrb.mxu0 %v2216_v4  ;;  %1382 = vmatpush.bf16.msrb.mxu3 %v2428_v0 }
  0x4a   :  { %858 = vmatpush.bf16.msrb.mxu0 %v2208_v38 }
  0x4e   :  { %859 = vmatpush.bf16.msrb.mxu0 %v2200_v20 }
  0x53   :  { %259 = vmatmul.bf16.gmra.mxu0 %v138_v13 }
  0x54   :  { %348 = vmatmul.bf16.gmra.mxu1 %v138_v13  ;;  %v2187_v13 = vld [vmem:[%s3973_s1 + $0x80] sm:$0xf] }
  0x63   :  { %264 = vmatmul.bf16.gmra.mxu0 %v139_v16 }
  0x64   :  { %353 = vmatmul.bf16.gmra.mxu1 %v139_v16  ;;  %v2188_v16 = vor.u32 %v2522_v14, %v2187_v13 }
  0x66   :  { %682 = vmatpush.bf16.msra.mxu2 %v2188_v16 }
  0x6a   :  { %1292 = vmatpush.bf16.msrb.mxu2 %v2372_v24 }
  0x6e   :  { %1293 = vmatpush.bf16.msrb.mxu2 %v2364_v61  ;;  %v127_v61 = vld [vmem:[%s3975_s0 + $0xc0] sm:$0xff] }
  0x73   :  { %269 = vmatmul.bf16.gmra.mxu0 %v140_v31 }
  0x74   :  { %358 = vmatmul.bf16.gmra.mxu1 %v140_v31  ;;  %v97_v31 = vld [vmem:[%s3974_s3] ss:$4 sm:$0x3] }
  0x75   :  { %v3012_v34 = vperm.slane %v97_v31, 0  ;;  %v3014_v35 = vperm.slane %v97_v31, 1 }
  0x83   :  { %274 = vmatmul.bf16.gmra.mxu0 %v141_v55 }
  0x84   :  { %363 = vmatmul.bf16.gmra.mxu1 %v141_v55 }
  0x93   :  { %279 = vmatmul.bf16.gmra.mxu0 %v142_v21 }
  0x94   :  { %368 = vmatmul.bf16.gmra.mxu1 %v142_v21  ;;  %v2539_v21 = vld [vmem:[%s3973_s1 + $0x114] sm:$0xf] }
  0x95   :  { %v2264_v23 = vor.u32 %v2539_v21, %v2261_v22  ;;  %v129_v22 = vld [vmem:[%s3975_s0 + $0xd0] sm:$0xff] }
  0x97   :  { %948 = vmatpush.bf16.msrb.mxu1 %v2264_v23  ;;  %v130_v23 = vld [vmem:[%s3975_s0 + $0xd8] sm:$0xff] }
  0xa0   :  { %v245_v32 = vpop.f32.mrf.mxu0 }
  0xa1   :  { %v334_v33 = vpop.f32.mrf.mxu1  ;;  %v246_v42 = vadd.f32 %v245_v32, %v3012_v34 }
  0xa2   :  { %v335_v43 = vadd.f32 %v334_v33, %v3014_v35 }
  0xa3   :  { %284 = vmatmul.bf16.gmra.mxu0 %v143_v30  ;;  %v414_v48 = vmax.f32 %v246_v42, 0.0  ;;  %v2355_v42 = vld [vmem:[%s3973_s1 + $0x1d0] sm:$0xf] }
  0xa4   :  { %373 = vmatmul.bf16.gmra.mxu1 %v143_v30  ;;  %v415_v50 = vmax.f32 %v335_v43, 0.0  ;;  %v2564_v43 = vld [vmem:[%s3973_s1 + $0x1d4] sm:$0xf0] }
  0xa8   :  { %v247_v44 = vpop.f32.mrf.mxu0 }
  0xa9   :  { %v248_v45 = vadd.f32 %v247_v44, %v3012_v34  ;;  %v336_v46 = vpop.f32.mrf.mxu1 }
  0xaa   :  { %v337_v47 = vadd.f32 %v336_v46, %v3014_v35  ;;  %v2419_v46 = vld [vmem:[%s3973_s1 + $0x250] sm:$0xf] }
  0xab   :  { %v416_v49 = vmax.f32 %v248_v45, 0.0  ;;  %v2356_v45 = vor.u32 %v2564_v43, %v2355_v42 }
  0xac   :  { %v417_v51 = vmax.f32 %v337_v47, 0.0  ;;  %v2580_v47 = vld [vmem:[%s3973_s1 + $0x254] sm:$0xf0] }
  0xad   :  { %v3038_v54 = vpack.c.bf16 %v416_v49, %v414_v48  ;;  %1294 = vmatpush.bf16.msrb.mxu2 %v2356_v45  ;;  %v2420_v48 = vor.u32 %v2580_v47, %v2419_v46 }
  0xae   :  { %v3040_v55 = vpack.c.bf16 %v417_v51, %v415_v50 }
  0xaf   :  { %683 = vmatmul.bf16.vlgmr.msra.gmra.mxu2 %v3038_v54  ;;  %1383 = vmatpush.bf16.msrb.mxu3 %v2420_v48 }
  0xb0   :  { %772 = vmatmul.bf16.vlgmr.msra.gmra.mxu3 %v3040_v55  ;;  %v250_v57 = vpop.f32.mrf.mxu0 }
  0xb1   :  { %v339_v60 = vpop.f32.mrf.mxu1  ;;  %v251_v1 = vadd.f32 %v250_v57, %v3012_v34 }
  0xb2   :  { %v340_v2 = vadd.f32 %v339_v60, %v3014_v35 }
  0xb3   :  { %289 = vmatmul.bf16.gmra.mxu0 %v144_v56  ;;  %v418_v7 = vmax.f32 %v251_v1, 0.0  ;;  %v147_v1 = vpack.c.bf16 %v128_v62, %v127_v61  ;;  %v2583_v61 = vld [vmem:[%s3973_s1 + $0x274] sm:$0xf]  ;;  %v2437_v62 = vld [vmem:[%s3973_s1 + $0x278] sm:$0xf0] }
  0xb4   :  { %378 = vmatmul.bf16.gmra.mxu1 %v144_v56  ;;  %v419_v9 = vmax.f32 %v340_v2, 0.0 }
  0xb8   :  { %v252_v3 = vpop.f32.mrf.mxu0 }
  0xb9   :  { %v253_v4 = vadd.f32 %v252_v3, %v3012_v34  ;;  %v341_v5 = vpop.f32.mrf.mxu1 }
  0xba   :  { %v342_v6 = vadd.f32 %v341_v5, %v3014_v35  ;;  %v2189_v5 = vld [vmem:[%s3973_s1 + $0x88] sm:$0xf0] }
  0xbb   :  { %v420_v8 = vmax.f32 %v253_v4, 0.0  ;;  %v2521_v4 = vld [vmem:[%s3973_s1 + $0x84] sm:$0xf] }
  0xbc   :  { %v421_v10 = vmax.f32 %v342_v6, 0.0  ;;  %v2192_v6 = vor.u32 %v2521_v4, %v2189_v5 }
  0xbd   :  { %v3066_v13 = vpack.c.bf16 %v420_v8, %v418_v7  ;;  %v2537_v7 = vld [vmem:[%s3973_s1 + $0x104] sm:$0xf]  ;;  %v2253_v8 = vld [vmem:[%s3973_s1 + $0x108] sm:$0xf0] }
  0xbe   :  { %v3068_v14 = vpack.c.bf16 %v421_v10, %v419_v9  ;;  %v2256_v9 = vor.u32 %v2537_v7, %v2253_v8  ;;  %860 = vmatpush.bf16.msrb.mxu0 %v2192_v6 }
  0xbf   :  { %688 = vmatmul.bf16.gmra.mxu2 %v3066_v13 }
  0xc0   :  { %777 = vmatmul.bf16.gmra.mxu3 %v3068_v14  ;;  %v255_v16 = vpop.f32.mrf.mxu0  ;;  %949 = vmatpush.bf16.msrb.mxu1 %v2256_v9 }
  0xc1   :  { %v344_v17 = vpop.f32.mrf.mxu1  ;;  %v256_v24 = vadd.f32 %v255_v16, %v3012_v34 }
  0xc2   :  { %v345_v25 = vadd.f32 %v344_v17, %v3014_v35 }
  0xc3   :  { %294 = vmatmul.bf16.gmra.mxu0 %v145_v15  ;;  %v422_v30 = vmax.f32 %v256_v24, 0.0 }
  0xc4   :  { %383 = vmatmul.bf16.gmra.mxu1 %v145_v15  ;;  %v423_v32 = vmax.f32 %v345_v25, 0.0 }
  0xc8   :  { %v257_v26 = vpop.f32.mrf.mxu0 }
  0xc9   :  { %v258_v27 = vadd.f32 %v257_v26, %v3012_v34  ;;  %v346_v28 = vpop.f32.mrf.mxu1  ;;  %v148_v26 = vpack.c.bf16 %v130_v23, %v129_v22 }
  0xca   :  { %v347_v29 = vadd.f32 %v346_v28, %v3014_v35  ;;  %v2347_v28 = vld [vmem:[%s3973_s1 + $0x1c0] sm:$0xf] }
  0xcb   :  { %v424_v31 = vmax.f32 %v258_v27, 0.0 }
  0xcc   :  { %v425_v33 = vmax.f32 %v347_v29, 0.0  ;;  %v2562_v29 = vld [vmem:[%s3973_s1 + $0x1c4] sm:$0xf0] }
  0xcd   :  { %v3094_v38 = vpack.c.bf16 %v424_v31, %v422_v30  ;;  %v2348_v31 = vor.u32 %v2562_v29, %v2347_v28 }
  0xce   :  { %v3096_v39 = vpack.c.bf16 %v425_v33, %v423_v32  ;;  %v2411_v32 = vld [vmem:[%s3973_s1 + $0x240] sm:$0xf]  ;;  %v2578_v33 = vld [vmem:[%s3973_s1 + $0x244] sm:$0xf0] }
  0xcf   :  { %693 = vmatmul.bf16.gmra.mxu2 %v3094_v38  ;;  %v2412_v36 = vor.u32 %v2578_v33, %v2411_v32 }
  0xd0   :  { %782 = vmatmul.bf16.gmra.mxu3 %v3096_v39  ;;  %v260_v41 = vpop.f32.mrf.mxu0  ;;  %1295 = vmatpush.bf16.msrb.mxu2 %v2348_v31 }
  0xd1   :  { %v349_v44 = vpop.f32.mrf.mxu1  ;;  %v261_v49 = vadd.f32 %v260_v41, %v3012_v34  ;;  %1384 = vmatpush.bf16.msrb.mxu3 %v2412_v36 }
  0xd2   :  { %v350_v50 = vadd.f32 %v349_v44, %v3014_v35 }
  0xd3   :  { %299 = vmatmul.bf16.gmra.mxu0 %v146_v40  ;;  %v426_v57 = vmax.f32 %v261_v49, 0.0  ;;  %v131_v49 = vld [vmem:[%s3975_s0 + $0xe0] sm:$0xff] }
  0xd4   :  { %388 = vmatmul.bf16.gmra.mxu1 %v146_v40  ;;  %v427_v59 = vmax.f32 %v350_v50, 0.0  ;;  %v132_v50 = vld [vmem:[%s3975_s0 + $0xe8] sm:$0xff] }
  0xd8   :  { %v262_v51 = vpop.f32.mrf.mxu0 }
  0xd9   :  { %v263_v52 = vadd.f32 %v262_v51, %v3012_v34  ;;  %v351_v53 = vpop.f32.mrf.mxu1 }
  0xda   :  { %v352_v56 = vadd.f32 %v351_v53, %v3014_v35  ;;  %v149_v53 = vpack.c.bf16 %v132_v50, %v131_v49  ;;  %v2365_v49 = vld [vmem:[%s3973_s1 + $0x1e8] sm:$0xf0]  ;;  %v2581_v50 = vld [vmem:[%s3973_s1 + $0x264] sm:$0xf] }
  0xdb   :  { %v428_v58 = vmax.f32 %v263_v52, 0.0 }
  0xdc   :  { %v429_v60 = vmax.f32 %v352_v56, 0.0 }
  0xdd   :  { %v3122_v63 = vpack.c.bf16 %v428_v58, %v426_v57  ;;  %v2567_v58 = vld [vmem:[%s3973_s1 + $0x1f4] sm:$0xf] }
  0xde   :  { %v3124_v0 = vpack.c.bf16 %v429_v60, %v427_v59  ;;  %v2373_v59 = vld [vmem:[%s3973_s1 + $0x1f8] sm:$0xf0] }
  0xdf   :  { %698 = vmatmul.bf16.gmra.mxu2 %v3122_v63  ;;  %v2376_v60 = vor.u32 %v2567_v58, %v2373_v59 }
  0xe0   :  { %787 = vmatmul.bf16.gmra.mxu3 %v3124_v0  ;;  %v265_v2 = vpop.f32.mrf.mxu0 }
  0xe1   :  { %v354_v3 = vpop.f32.mrf.mxu1  ;;  %v266_v10 = vadd.f32 %v265_v2, %v3012_v34  ;;  %1470 = vmatpush.bf16.msra.mxu0 %v2376_v60 }
  0xe2   :  { %v355_v11 = vadd.f32 %v354_v3, %v3014_v35 }
  0xe3   :  { %304 = vmatmul.bf16.gmra.mxu0 %v147_v1  ;;  %v430_v18 = vmax.f32 %v266_v10, 0.0 }
  0xe4   :  { %393 = vmatmul.bf16.gmra.mxu1 %v147_v1  ;;  %v431_v20 = vmax.f32 %v355_v11, 0.0  ;;  %v2440_v1 = vor.u32 %v2583_v61, %v2437_v62 }
  0xe6   :  { %1559 = vmatpush.bf16.msra.mxu1 %v2440_v1 }
  0xe8   :  { %v267_v12 = vpop.f32.mrf.mxu0 }
  0xe9   :  { %v268_v15 = vadd.f32 %v267_v12, %v3012_v34  ;;  %v356_v16 = vpop.f32.mrf.mxu1  ;;  %v133_v12 = vld [vmem:[%s3975_s0 + $0xf0] sm:$0xff] }
  0xea   :  { %v357_v17 = vadd.f32 %v356_v16, %v3014_v35 }
  0xeb   :  { %v432_v19 = vmax.f32 %v268_v15, 0.0  ;;  %v134_v15 = vld [vmem:[%s3975_s0 + $0xf8] sm:$0xff] }
  0xec   :  { %v433_v21 = vmax.f32 %v357_v17, 0.0 }
  0xed   :  { %v3150_v24 = vpack.c.bf16 %v432_v19, %v430_v18  ;;  %v150_v18 = vpack.c.bf16 %v134_v15, %v133_v12 }
  0xee   :  { %v3152_v25 = vpack.c.bf16 %v433_v21, %v431_v20  ;;  %v2339_v20 = vld [vmem:[%s3973_s1 + $0x1b0] sm:$0xf]  ;;  %v2560_v21 = vld [vmem:[%s3973_s1 + $0x1b4] sm:$0xf0] }
  0xef   :  { %703 = vmatmul.bf16.gmra.mxu2 %v3150_v24  ;;  %v2340_v23 = vor.u32 %v2560_v21, %v2339_v20  ;;  %v2574_v20 = vld [vmem:[%s3973_s1 + $0x224] sm:$0xf0] }
  0xf0   :  { %792 = vmatmul.bf16.gmra.mxu3 %v3152_v25  ;;  %v270_v27 = vpop.f32.mrf.mxu0 }
  0xf1   :  { %v359_v30 = vpop.f32.mrf.mxu1  ;;  %v271_v37 = vadd.f32 %v270_v27, %v3012_v34  ;;  %1296 = vmatpush.bf16.msrb.mxu2 %v2340_v23  ;;  %v2576_v27 = vld [vmem:[%s3973_s1 + $0x234] sm:$0xf0] }
  0xf2   :  { %v360_v40 = vadd.f32 %v359_v30, %v3014_v35 }
  0xf3   :  { %309 = vmatmul.bf16.gmra.mxu0 %v148_v26  ;;  %v434_v45 = vmax.f32 %v271_v37, 0.0 }
  0xf4   :  { %398 = vmatmul.bf16.gmra.mxu1 %v148_v26  ;;  %v435_v47 = vmax.f32 %v360_v40, 0.0  ;;  %v2403_v26 = vld [vmem:[%s3973_s1 + $0x230] sm:$0xf] }
  0xf5   :  { %v2404_v28 = vor.u32 %v2576_v27, %v2403_v26 }
  0xf7   :  { %1385 = vmatpush.bf16.msrb.mxu3 %v2404_v28 }
  0xf8   :  { %v272_v41 = vpop.f32.mrf.mxu0 }
  0xf9   :  { %v273_v42 = vadd.f32 %v272_v41, %v3012_v34  ;;  %v361_v43 = vpop.f32.mrf.mxu1 }
  0xfa   :  { %v362_v44 = vadd.f32 %v361_v43, %v3014_v35 }
  0xfb   :  { %v436_v46 = vmax.f32 %v273_v42, 0.0 }
  0xfc   :  { %v437_v48 = vmax.f32 %v362_v44, 0.0 }
  0xfd   :  { %v3178_v51 = vpack.c.bf16 %v436_v46, %v434_v45 }
  0xfe   :  { %v3180_v52 = vpack.c.bf16 %v437_v48, %v435_v47  ;;  %v2565_v48 = vld [vmem:[%s3973_s1 + $0x1e4] sm:$0xf] }
  0xff   :  { %708 = vmatmul.bf16.gmra.mxu2 %v3178_v51 }
 0x100   :  { %797 = vmatmul.bf16.gmra.mxu3 %v3180_v52  ;;  %v275_v56 = vpop.f32.mrf.mxu0 }
 0x101   :  { %v364_v57 = vpop.f32.mrf.mxu1  ;;  %v276_v2 = vadd.f32 %v275_v56, %v3012_v34 }
 0x102   :  { %v365_v3 = vadd.f32 %v364_v57, %v3014_v35 }
 0x103   :  { %314 = vmatmul.bf16.gmra.mxu0 %v149_v53  ;;  %v438_v8 = vmax.f32 %v276_v2, 0.0 }
 0x104   :  { %403 = vmatmul.bf16.gmra.mxu1 %v149_v53  ;;  %v439_v10 = vmax.f32 %v365_v3, 0.0  ;;  %v3255_v3 = vld [vmem:[%s3974_s3 + $0x1] ss:$4 sm:$0x3] }
 0x108   :  { %v277_v4 = vpop.f32.mrf.mxu0 }
 0x109   :  { %v278_v5 = vadd.f32 %v277_v4, %v3012_v34  ;;  %v366_v6 = vpop.f32.mrf.mxu1 }
 0x10a   :  { %v367_v7 = vadd.f32 %v366_v6, %v3014_v35  ;;  %v3263_v6 = vperm.slane %v3255_v3, 0 }
 0x10b   :  { %v440_v9 = vmax.f32 %v278_v5, 0.0 }
 0x10c   :  { %v441_v11 = vmax.f32 %v367_v7, 0.0 }
 0x10d   :  { %v3206_v16 = vpack.c.bf16 %v440_v9, %v438_v8  ;;  %v2331_v8 = vld [vmem:[%s3973_s1 + $0x1a0] sm:$0xf]  ;;  %v2558_v9 = vld [vmem:[%s3973_s1 + $0x1a4] sm:$0xf0] }
 0x10e   :  { %v3208_v17 = vpack.c.bf16 %v441_v11, %v439_v10  ;;  %v2332_v11 = vor.u32 %v2558_v9, %v2331_v8 }
 0x10f   :  { %713 = vmatmul.bf16.gmra.mxu2 %v3206_v16 }
 0x110   :  { %802 = vmatmul.bf16.gmra.mxu3 %v3208_v17  ;;  %v280_v19 = vpop.f32.mrf.mxu0  ;;  %1297 = vmatpush.bf16.msrb.mxu2 %v2332_v11 }
 0x111   :  { %v369_v22 = vpop.f32.mrf.mxu1  ;;  %v281_v29 = vadd.f32 %v280_v19, %v3012_v34  ;;  %v2395_v19 = vld [vmem:[%s3973_s1 + $0x220] sm:$0xf] }
 0x112   :  { %v370_v30 = vadd.f32 %v369_v22, %v3014_v35  ;;  %v2396_v22 = vor.u32 %v2574_v20, %v2395_v19 }
 0x113   :  { %319 = vmatmul.bf16.gmra.mxu0 %v150_v18  ;;  %v442_v37 = vmax.f32 %v281_v29, 0.0 }
 0x114   :  { %408 = vmatmul.bf16.gmra.mxu1 %v150_v18  ;;  %v443_v41 = vmax.f32 %v370_v30, 0.0  ;;  %1386 = vmatpush.bf16.msrb.mxu3 %v2396_v22 }
 0x118   :  { %v282_v31 = vpop.f32.mrf.mxu0 }
 0x119   :  { %v283_v32 = vadd.f32 %v282_v31, %v3012_v34  ;;  %v371_v33 = vpop.f32.mrf.mxu1 }
 0x11a   :  { %v372_v36 = vadd.f32 %v371_v33, %v3014_v35 }
 0x11b   :  { %v444_v40 = vmax.f32 %v283_v32, 0.0 }
 0x11c   :  { %v445_v42 = vmax.f32 %v372_v36, 0.0 }
 0x11d   :  { %v3228_v43 = vpack.c.bf16 %v444_v40, %v442_v37 }
 0x11e   :  { %v3230_v44 = vpack.c.bf16 %v445_v42, %v443_v41 }
 0x11f   :  { %718 = vmatmul.bf16.gmra.mxu2 %v3228_v43 }
 0x120   :  { %807 = vmatmul.bf16.gmra.mxu3 %v3230_v44  ;;  %v285_v45 = vpop.f32.mrf.mxu0 }
 0x121   :  { %v374_v46 = vpop.f32.mrf.mxu1  ;;  %v286_v47 = vadd.f32 %v285_v45, %v3012_v34 }
 0x122   :  { %v375_v53 = vadd.f32 %v374_v46, %v3014_v35 }
 0x123   :  { %861 = vmatmul.bf16.vlgmr.msrb.gmra.mxu0 %v3038_v54  ;;  %v2368_v54 = vor.u32 %v2565_v48, %v2365_v49  ;;  %v446_v61 = vmax.f32 %v286_v47, 0.0 }
 0x124   :  { %950 = vmatmul.bf16.vlgmr.msrb.gmra.mxu1 %v3040_v55  ;;  %v2429_v55 = vld [vmem:[%s3973_s1 + $0x268] sm:$0xf0]  ;;  %v447_v1 = vmax.f32 %v375_v53, 0.0 }
 0x125   :  { %v2432_v59 = vor.u32 %v2581_v50, %v2429_v55  ;;  %1471 = vmatpush.bf16.msra.mxu0 %v2368_v54 }
 0x127   :  { %1560 = vmatpush.bf16.msra.mxu1 %v2432_v59 }
 0x128   :  { %v287_v56 = vpop.f32.mrf.mxu0 }
 0x129   :  { %v288_v57 = vadd.f32 %v287_v56, %v3012_v34  ;;  %v376_v58 = vpop.f32.mrf.mxu1 }
 0x12a   :  { %v377_v60 = vadd.f32 %v376_v58, %v3014_v35  ;;  %v2357_v58 = vld [vmem:[%s3973_s1 + $0x1d8] sm:$0xf0] }
 0x12b   :  { %v448_v62 = vmax.f32 %v288_v57, 0.0  ;;  %v2563_v57 = vld [vmem:[%s3973_s1 + $0x1d4] sm:$0xf] }
 0x12c   :  { %v449_v2 = vmax.f32 %v377_v60, 0.0 }
 0x12d   :  { %v3257_v4 = vpack.c.bf16 %v448_v62, %v446_v61  ;;  %v2360_v61 = vor.u32 %v2563_v57, %v2357_v58 }
 0x12e   :  { %v3259_v5 = vpack.c.bf16 %v449_v2, %v447_v1 }
 0x12f   :  { %723 = vmatmul.bf16.gmra.mxu2 %v3257_v4  ;;  %1472 = vmatpush.bf16.msra.mxu0 %v2360_v61 }
 0x130   :  { %812 = vmatmul.bf16.gmra.mxu3 %v3259_v5  ;;  %v290_v7 = vpop.f32.mrf.mxu0 }
 0x131   :  { %v379_v10 = vpop.f32.mrf.mxu1  ;;  %v291_v23 = vadd.f32 %v290_v7, %v3012_v34 }
 0x132   :  { %v684_v12 = vpop.f32.mrf.mxu2  ;;  %v380_v26 = vadd.f32 %v379_v10, %v3014_v35 }
 0x133   :  { %v685_v15 = vadd.f32 %v684_v12, %v3263_v6  ;;  %v773_v18 = vpop.f32.mrf.mxu3  ;;  %866 = vmatmul.bf16.gmra.mxu0 %v3066_v13  ;;  %v450_v30 = vmax.f32 %v291_v23, 0.0 }
 0x134   :  { %955 = vmatmul.bf16.gmra.mxu1 %v3068_v14  ;;  %v451_v36 = vmax.f32 %v380_v26, 0.0 }
 0x135   :  { %v774_v21 = vadd.f32 %v773_v18, %v685_v15 }
 0x137   :  { %v1031_v45 = vmax.f32 %v774_v21, 0.0 }
 0x138   :  { %v292_v27 = vpop.f32.mrf.mxu0 }
 0x139   :  { %v293_v13 = vadd.f32 %v292_v27, %v3012_v34  ;;  %v381_v28 = vpop.f32.mrf.mxu1  ;;  %v2323_v27 = vld [vmem:[%s3973_s1 + $0x190] sm:$0xf] }
 0x13a   :  { %v382_v14 = vadd.f32 %v381_v28, %v3014_v35  ;;  %v686_v29 = vpop.f32.mrf.mxu2 }
 0x13b   :  { %v452_v31 = vmax.f32 %v293_v13, 0.0  ;;  %v687_v32 = vadd.f32 %v686_v29, %v3263_v6  ;;  %v775_v33 = vpop.f32.mrf.mxu3  ;;  %v2556_v13 = vld [vmem:[%s3973_s1 + $0x194] sm:$0xf0] }
 0x13c   :  { %v453_v37 = vmax.f32 %v382_v14, 0.0  ;;  %v2324_v14 = vor.u32 %v2556_v13, %v2323_v27 }
 0x13d   :  { %v776_v40 = vadd.f32 %v775_v33, %v687_v32  ;;  %v3286_v41 = vpack.c.bf16 %v452_v31, %v450_v30  ;;  %v2387_v33 = vld [vmem:[%s3973_s1 + $0x210] sm:$0xf] }
 0x13e   :  { %v3288_v42 = vpack.c.bf16 %v453_v37, %v451_v36  ;;  %1298 = vmatpush.bf16.msrb.mxu2 %v2324_v14  ;;  %v2572_v36 = vld [vmem:[%s3973_s1 + $0x214] sm:$0xf0] }
 0x13f   :  { %v1033_v46 = vmax.f32 %v776_v40, 0.0  ;;  %728 = vmatmul.bf16.gmra.mxu2 %v3286_v41  ;;  %v2388_v40 = vor.u32 %v2572_v36, %v2387_v33 }
 0x140   :  { %817 = vmatmul.bf16.gmra.mxu3 %v3288_v42  ;;  %v295_v47 = vpop.f32.mrf.mxu0 }
 0x141   :  { %v3292_v48 = vpack.c.bf16 %v1033_v46, %v1031_v45  ;;  %v384_v49 = vpop.f32.mrf.mxu1  ;;  %v296_v55 = vadd.f32 %v295_v47, %v3012_v34  ;;  %1387 = vmatpush.bf16.msrb.mxu3 %v2388_v40 }
 0x142   :  { %v689_v50 = vpop.f32.mrf.mxu2  ;;  %v385_v59 = vadd.f32 %v384_v49, %v3014_v35 }
 0x143   :  { %v690_v53 = vadd.f32 %v689_v50, %v3263_v6  ;;  %v778_v56 = vpop.f32.mrf.mxu3  ;;  %871 = vmatmul.bf16.gmra.mxu0 %v3094_v38  ;;  %v2579_v38 = vld [vmem:[%s3973_s1 + $0x254] sm:$0xf]  ;;  %v454_v9 = vmax.f32 %v296_v55, 0.0 }
 0x144   :  { %960 = vmatmul.bf16.gmra.mxu1 %v3096_v39  ;;  %v2421_v39 = vld [vmem:[%s3973_s1 + $0x258] sm:$0xf0]  ;;  %v455_v15 = vmax.f32 %v385_v59, 0.0 }
 0x145   :  { %v779_v54 = vadd.f32 %v778_v56, %v690_v53  ;;  %v2424_v2 = vor.u32 %v2579_v38, %v2421_v39 }
 0x147   :  { %1561 = vmatpush.bf16.msra.mxu1 %v2424_v2  ;;  %v1035_v22 = vmax.f32 %v779_v54, 0.0 }
 0x148   :  { %v297_v60 = vpop.f32.mrf.mxu0 }
 0x149   :  { %v298_v62 = vadd.f32 %v297_v60, %v3012_v34  ;;  %v386_v1 = vpop.f32.mrf.mxu1 }
 0x14a   :  { %v387_v7 = vadd.f32 %v386_v1, %v3014_v35  ;;  %v691_v8 = vpop.f32.mrf.mxu2 }
 0x14b   :  { %v456_v10 = vmax.f32 %v298_v62, 0.0  ;;  %v692_v11 = vadd.f32 %v691_v8, %v3263_v6  ;;  %v780_v12 = vpop.f32.mrf.mxu3 }
 0x14c   :  { %v457_v18 = vmax.f32 %v387_v7, 0.0 }
 0x14d   :  { %v781_v19 = vadd.f32 %v780_v12, %v692_v11  ;;  %v3314_v20 = vpack.c.bf16 %v456_v10, %v454_v9  ;;  %v2561_v12 = vld [vmem:[%s3973_s1 + $0x1c4] sm:$0xf] }
 0x14e   :  { %v3316_v21 = vpack.c.bf16 %v457_v18, %v455_v15  ;;  %v2349_v15 = vld [vmem:[%s3973_s1 + $0x1c8] sm:$0xf0] }
 0x14f   :  { %v1037_v23 = vmax.f32 %v781_v19, 0.0  ;;  %733 = vmatmul.bf16.gmra.mxu2 %v3314_v20 }
 0x150   :  { %822 = vmatmul.bf16.gmra.mxu3 %v3316_v21  ;;  %v300_v26 = vpop.f32.mrf.mxu0 }
 0x151   :  { %v389_v28 = vpop.f32.mrf.mxu1  ;;  %v3326_v29 = vpack.c.bf16 %v1037_v23, %v1035_v22  ;;  %v301_v45 = vadd.f32 %v300_v26, %v3012_v34  ;;  %v2352_v22 = vor.u32 %v2561_v12, %v2349_v15 }
 0x152   :  { %v694_v30 = vpop.f32.mrf.mxu2  ;;  %v390_v46 = vadd.f32 %v389_v28, %v3014_v35 }
 0x153   :  { %v695_v31 = vadd.f32 %v694_v30, %v3263_v6  ;;  %v783_v32 = vpop.f32.mrf.mxu3  ;;  %876 = vmatmul.bf16.gmra.mxu0 %v3122_v63  ;;  %v458_v53 = vmax.f32 %v301_v45, 0.0 }
 0x154   :  { %965 = vmatmul.bf16.gmra.mxu1 %v3124_v0  ;;  %v459_v57 = vmax.f32 %v390_v46, 0.0  ;;  %1473 = vmatpush.bf16.msra.mxu0 %v2352_v22 }
 0x155   :  { %v784_v37 = vadd.f32 %v783_v32, %v695_v31 }
 0x157   :  { %v1039_v38 = vmax.f32 %v784_v37, 0.0 }
 0x158   :  { %v302_v47 = vpop.f32.mrf.mxu0 }
 0x159   :  { %v303_v63 = vadd.f32 %v302_v47, %v3012_v34  ;;  %v391_v49 = vpop.f32.mrf.mxu1 }
 0x15a   :  { %v392_v0 = vadd.f32 %v391_v49, %v3014_v35  ;;  %v696_v50 = vpop.f32.mrf.mxu2  ;;  %v2315_v49 = vld [vmem:[%s3973_s1 + $0x180] sm:$0xf] }
 0x15b   :  { %v460_v56 = vmax.f32 %v303_v63, 0.0  ;;  %v697_v54 = vadd.f32 %v696_v50, %v3263_v6  ;;  %v785_v55 = vpop.f32.mrf.mxu3 }
 0x15c   :  { %v461_v58 = vmax.f32 %v392_v0, 0.0  ;;  %v2554_v0 = vld [vmem:[%s3973_s1 + $0x184] sm:$0xf0] }
 0x15d   :  { %v786_v59 = vadd.f32 %v785_v55, %v697_v54  ;;  %v3342_v60 = vpack.c.bf16 %v460_v56, %v458_v53  ;;  %v2316_v53 = vor.u32 %v2554_v0, %v2315_v49 }
 0x15e   :  { %v3344_v61 = vpack.c.bf16 %v461_v58, %v459_v57  ;;  %v2379_v58 = vld [vmem:[%s3973_s1 + $0x200] sm:$0xf] }
 0x15f   :  { %v1041_v39 = vmax.f32 %v786_v59, 0.0  ;;  %738 = vmatmul.bf16.gmra.mxu2 %v3342_v60  ;;  %v2570_v59 = vld [vmem:[%s3973_s1 + $0x204] sm:$0xf0] }
 0x160   :  { %827 = vmatmul.bf16.gmra.mxu3 %v3344_v61  ;;  %v305_v62 = vpop.f32.mrf.mxu0  ;;  %1299 = vmatpush.bf16.msrb.mxu2 %v2316_v53 }
 0x161   :  { %v394_v1 = vpop.f32.mrf.mxu1  ;;  %v3348_v2 = vpack.c.bf16 %v1041_v39, %v1039_v38  ;;  %v306_v11 = vadd.f32 %v305_v62, %v3012_v34  ;;  %v2380_v39 = vor.u32 %v2570_v59, %v2379_v58 }
 0x162   :  { %v699_v7 = vpop.f32.mrf.mxu2  ;;  %v395_v18 = vadd.f32 %v394_v1, %v3014_v35 }
 0x163   :  { %v700_v8 = vadd.f32 %v699_v7, %v3263_v6  ;;  %v788_v9 = vpop.f32.mrf.mxu3  ;;  %881 = vmatmul.bf16.gmra.mxu0 %v3150_v24  ;;  %v2577_v24 = vld [vmem:[%s3973_s1 + $0x244] sm:$0xf]  ;;  %v462_v14 = vmax.f32 %v306_v11, 0.0  ;;  %1388 = vmatpush.bf16.msrb.mxu3 %v2380_v39 }
 0x164   :  { %970 = vmatmul.bf16.gmra.mxu1 %v3152_v25  ;;  %v2413_v25 = vld [vmem:[%s3973_s1 + $0x248] sm:$0xf0]  ;;  %v463_v33 = vmax.f32 %v395_v18, 0.0 }
 0x165   :  { %v789_v10 = vadd.f32 %v788_v9, %v700_v8  ;;  %v2416_v27 = vor.u32 %v2577_v24, %v2413_v25 }
 0x167   :  { %1562 = vmatpush.bf16.msra.mxu1 %v2416_v27  ;;  %v1043_v46 = vmax.f32 %v789_v10, 0.0 }
 0x168   :  { %v307_v19 = vpop.f32.mrf.mxu0 }
 0x169   :  { %v308_v23 = vadd.f32 %v307_v19, %v3012_v34  ;;  %v396_v26 = vpop.f32.mrf.mxu1 }
 0x16a   :  { %v397_v13 = vadd.f32 %v396_v26, %v3014_v35  ;;  %v701_v28 = vpop.f32.mrf.mxu2 }
 0x16b   :  { %v464_v30 = vmax.f32 %v308_v23, 0.0  ;;  %v702_v31 = vadd.f32 %v701_v28, %v3263_v6  ;;  %v790_v32 = vpop.f32.mrf.mxu3 }
 0x16c   :  { %v465_v36 = vmax.f32 %v397_v13, 0.0 }
 0x16d   :  { %v791_v37 = vadd.f32 %v790_v32, %v702_v31  ;;  %v3370_v40 = vpack.c.bf16 %v464_v30, %v462_v14 }
 0x16e   :  { %v3372_v45 = vpack.c.bf16 %v465_v36, %v463_v33  ;;  %v2559_v36 = vld [vmem:[%s3973_s1 + $0x1b4] sm:$0xf] }
 0x16f   :  { %v1045_v47 = vmax.f32 %v791_v37, 0.0  ;;  %743 = vmatmul.bf16.gmra.mxu2 %v3370_v40  ;;  %v2341_v37 = vld [vmem:[%s3973_s1 + $0x1b8] sm:$0xf0] }
 0x170   :  { %832 = vmatmul.bf16.gmra.mxu3 %v3372_v45  ;;  %v310_v63 = vpop.f32.mrf.mxu0 }
 0x171   :  { %v399_v50 = vpop.f32.mrf.mxu1  ;;  %v3382_v56 = vpack.c.bf16 %v1045_v47, %v1043_v46  ;;  %v311_v62 = vadd.f32 %v310_v63, %v3012_v34  ;;  %v2344_v63 = vor.u32 %v2559_v36, %v2341_v37 }
 0x172   :  { %v704_v54 = vpop.f32.mrf.mxu2  ;;  %v400_v1 = vadd.f32 %v399_v50, %v3014_v35 }
 0x173   :  { %v705_v55 = vadd.f32 %v704_v54, %v3263_v6  ;;  %v793_v57 = vpop.f32.mrf.mxu3  ;;  %886 = vmatmul.bf16.gmra.mxu0 %v3178_v51  ;;  %v466_v10 = vmax.f32 %v311_v62, 0.0 }
 0x174   :  { %975 = vmatmul.bf16.gmra.mxu1 %v3180_v52  ;;  %v467_v18 = vmax.f32 %v400_v1, 0.0  ;;  %1474 = vmatpush.bf16.msra.mxu0 %v2344_v63 }
 0x175   :  { %v794_v38 = vadd.f32 %v793_v57, %v705_v55 }
 0x177   :  { %v1047_v23 = vmax.f32 %v794_v38, 0.0 }
 0x178   :  { %v312_v7 = vpop.f32.mrf.mxu0 }
 0x179   :  { %v313_v51 = vadd.f32 %v312_v7, %v3012_v34  ;;  %v401_v8 = vpop.f32.mrf.mxu1 }
 0x17a   :  { %v402_v52 = vadd.f32 %v401_v8, %v3014_v35  ;;  %v706_v9 = vpop.f32.mrf.mxu2 }
 0x17b   :  { %v468_v11 = vmax.f32 %v313_v51, 0.0  ;;  %v707_v12 = vadd.f32 %v706_v9, %v3263_v6  ;;  %v795_v15 = vpop.f32.mrf.mxu3 }
 0x17c   :  { %v469_v19 = vmax.f32 %v402_v52, 0.0  ;;  %v2592_v52 = vld [vmem:[%s3976_s2 + $0x38] sm:$0xff] }
 0x17d   :  { %v796_v22 = vadd.f32 %v795_v15, %v707_v12  ;;  %v3398_v24 = vpack.c.bf16 %v468_v11, %v466_v10  ;;  %1873 = vmatpush.bf16.msra.mxu2 %v2592_v52 }
 0x17e   :  { %v3400_v25 = vpack.c.bf16 %v469_v19, %v467_v18 }
 0x17f   :  { %v1049_v26 = vmax.f32 %v796_v22, 0.0  ;;  %748 = vmatmul.bf16.gmra.mxu2 %v3398_v24  ;;  %v2600_v22 = vld [vmem:[%s3976_s2 + $0x78] sm:$0xff] }
 0x180   :  { %837 = vmatmul.bf16.gmra.mxu3 %v3400_v25  ;;  %v315_v27 = vpop.f32.mrf.mxu0 }
 0x181   :  { %v404_v13 = vpop.f32.mrf.mxu1  ;;  %v3404_v28 = vpack.c.bf16 %v1049_v26, %v1047_v23  ;;  %v316_v33 = vadd.f32 %v315_v27, %v3012_v34  ;;  %1962 = vmatpush.bf16.msra.mxu3 %v2600_v22 }
 0x182   :  { %v709_v14 = vpop.f32.mrf.mxu2  ;;  %v405_v46 = vadd.f32 %v404_v13, %v3014_v35 }
 0x183   :  { %v710_v30 = vadd.f32 %v709_v14, %v3263_v6  ;;  %v798_v31 = vpop.f32.mrf.mxu3  ;;  %891 = vmatmul.bf16.gmra.mxu0 %v3206_v16  ;;  %v2575_v16 = vld [vmem:[%s3973_s1 + $0x234] sm:$0xf]  ;;  %v470_v55 = vmax.f32 %v316_v33, 0.0 }
 0x184   :  { %980 = vmatmul.bf16.gmra.mxu1 %v3208_v17  ;;  %v2405_v17 = vld [vmem:[%s3973_s1 + $0x238] sm:$0xf0]  ;;  %v471_v38 = vmax.f32 %v405_v46, 0.0 }
 0x185   :  { %v799_v32 = vadd.f32 %v798_v31, %v710_v30  ;;  %v2408_v50 = vor.u32 %v2575_v16, %v2405_v17 }
 0x187   :  { %1563 = vmatpush.bf16.msra.mxu1 %v2408_v50  ;;  %v1051_v51 = vmax.f32 %v799_v32, 0.0 }
 0x188   :  { %v317_v47 = vpop.f32.mrf.mxu0 }
 0x189   :  { %v318_v49 = vadd.f32 %v317_v47, %v3012_v34  ;;  %v406_v0 = vpop.f32.mrf.mxu1 }
 0x18a   :  { %v407_v53 = vadd.f32 %v406_v0, %v3014_v35  ;;  %v711_v54 = vpop.f32.mrf.mxu2 }
 0x18b   :  { %v472_v57 = vmax.f32 %v318_v49, 0.0  ;;  %v712_v58 = vadd.f32 %v711_v54, %v3263_v6  ;;  %v800_v59 = vpop.f32.mrf.mxu3 }
 0x18c   :  { %v473_v39 = vmax.f32 %v407_v53, 0.0 }
 0x18d   :  { %v801_v62 = vadd.f32 %v800_v59, %v712_v58  ;;  %v3426_v1 = vpack.c.bf16 %v472_v57, %v470_v55  ;;  %v2557_v58 = vld [vmem:[%s3973_s1 + $0x1a4] sm:$0xf] }
 0x18e   :  { %v3428_v7 = vpack.c.bf16 %v473_v39, %v471_v38  ;;  %v2573_v39 = vld [vmem:[%s3973_s1 + $0x224] sm:$0xf] }
 0x18f   :  { %v1053_v8 = vmax.f32 %v801_v62, 0.0  ;;  %753 = vmatmul.bf16.gmra.mxu2 %v3426_v1 }
 0x190   :  { %842 = vmatmul.bf16.gmra.mxu3 %v3428_v7  ;;  %v320_v9 = vpop.f32.mrf.mxu0 }
 0x191   :  { %v409_v10 = vpop.f32.mrf.mxu1  ;;  %v3435_v11 = vpack.c.bf16 %v1053_v8, %v1051_v51  ;;  %v321_v23 = vadd.f32 %v320_v9, %v3012_v34 }
 0x192   :  { %v714_v12 = vpop.f32.mrf.mxu2  ;;  %v410_v26 = vadd.f32 %v409_v10, %v3014_v35 }
 0x193   :  { %v715_v15 = vadd.f32 %v714_v12, %v3263_v6  ;;  %v803_v18 = vpop.f32.mrf.mxu3  ;;  %896 = vmatmul.bf16.gmra.mxu0 %v3228_v43  ;;  %v474_v43 = vmax.f32 %v321_v23, 0.0 }
 0x194   :  { %985 = vmatmul.bf16.gmra.mxu1 %v3230_v44  ;;  %v475_v36 = vmax.f32 %v410_v26, 0.0 }
 0x195   :  { %v804_v19 = vadd.f32 %v803_v18, %v715_v15 }
 0x197   :  { %v1055_v16 = vmax.f32 %v804_v19, 0.0 }
 0x198   :  { %v322_v27 = vpop.f32.mrf.mxu0 }
 0x199   :  { %v323_v13 = vadd.f32 %v322_v27, %v3012_v34  ;;  %v411_v14 = vpop.f32.mrf.mxu1  ;;  %v2591_v27 = vld [vmem:[%s3976_s2 + $0x30] sm:$0xff] }
 0x19a   :  { %v412_v30 = vadd.f32 %v411_v14, %v3014_v35  ;;  %v716_v31 = vpop.f32.mrf.mxu2  ;;  %v3455_v35 = vperm.slane %v3255_v3, 1  ;;  %v2333_v3 = vld [vmem:[%s3973_s1 + $0x1a8] sm:$0xf0]  ;;  %1874 = vmatpush.bf16.msra.mxu2 %v2591_v27 }
 0x19b   :  { %v476_v32 = vmax.f32 %v323_v13, 0.0  ;;  %v717_v44 = vadd.f32 %v716_v31, %v3263_v6  ;;  %v805_v33 = vpop.f32.mrf.mxu3  ;;  %v2336_v38 = vor.u32 %v2557_v58, %v2333_v3 }
 0x19c   :  { %v477_v37 = vmax.f32 %v412_v30, 0.0 }
 0x19d   :  { %v806_v46 = vadd.f32 %v805_v33, %v717_v44  ;;  %v3448_v47 = vpack.c.bf16 %v476_v32, %v474_v43  ;;  %1475 = vmatpush.bf16.msra.mxu0 %v2336_v38 }
 0x19e   :  { %v3450_v63 = vpack.c.bf16 %v477_v37, %v475_v36  ;;  %v2599_v36 = vld [vmem:[%s3976_s2 + $0x70] sm:$0xff] }
 0x19f   :  { %v1057_v17 = vmax.f32 %v806_v46, 0.0  ;;  %758 = vmatmul.bf16.gmra.mxu2 %v3448_v47  ;;  %1963 = vmatpush.bf16.msra.mxu3 %v2599_v36  ;;  %v2590_v36 = vld [vmem:[%s3976_s2 + $0x28] sm:$0xff] }
 0x1a0   :  { %847 = vmatmul.bf16.gmra.mxu3 %v3450_v63  ;;  %v862_v34 = vpop.f32.mrf.mxu0  ;;  %1875 = vmatpush.bf16.msra.mxu2 %v2590_v36 }
 0x1a1   :  { %v951_v49 = vpop.f32.mrf.mxu1  ;;  %v3457_v0 = vpack.c.bf16 %v1057_v17, %v1055_v16  ;;  %v863_v55 = vadd.f32 %v862_v34, %v3455_v35 }
 0x1a2   :  { %v719_v50 = vpop.f32.mrf.mxu2 }
 0x1a3   :  { %v720_v53 = vadd.f32 %v719_v50, %v3263_v6  ;;  %v808_v54 = vpop.f32.mrf.mxu3  ;;  %901 = vmatmul.bf16.gmra.mxu0 %v3257_v4  ;;  %v2397_v4 = vld [vmem:[%s3973_s1 + $0x228] sm:$0xf0] }
 0x1a4   :  { %990 = vmatmul.bf16.gmra.mxu1 %v3259_v5  ;;  %v952_v5 = vadd.f32 %v951_v49, %v863_v55  ;;  %v2400_v8 = vor.u32 %v2573_v39, %v2397_v4 }
 0x1a5   :  { %v809_v57 = vadd.f32 %v808_v54, %v720_v53 }
 0x1a6   :  { %1564 = vmatpush.bf16.msra.mxu1 %v2400_v8  ;;  %v1032_v15 = vmax.f32 %v952_v5, 0.0  ;;  %v2555_v8 = vld [vmem:[%s3973_s1 + $0x194] sm:$0xf] }
 0x1a7   :  { %v1059_v22 = vmax.f32 %v809_v57, 0.0 }
 0x1a8   :  { %v864_v59 = vpop.f32.mrf.mxu0 }
 0x1a9   :  { %v865_v62 = vadd.f32 %v864_v59, %v3455_v35  ;;  %v953_v51 = vpop.f32.mrf.mxu1 }
 0x1aa   :  { %v721_v52 = vpop.f32.mrf.mxu2 }
 0x1ab   :  { %v954_v9 = vadd.f32 %v953_v51, %v865_v62  ;;  %v722_v10 = vadd.f32 %v721_v52, %v3263_v6  ;;  %v810_v12 = vpop.f32.mrf.mxu3  ;;  %v2325_v52 = vld [vmem:[%s3973_s1 + $0x198] sm:$0xf0] }
 0x1ad   :  { %v1034_v18 = vmax.f32 %v954_v9, 0.0  ;;  %v811_v19 = vadd.f32 %v810_v12, %v722_v10  ;;  %v2328_v10 = vor.u32 %v2555_v8, %v2325_v52  ;;  %v2571_v12 = vld [vmem:[%s3973_s1 + $0x214] sm:$0xf] }
 0x1af   :  { %v3477_v23 = vpack.c.bf16 %v1034_v18, %v1032_v15  ;;  %v1061_v26 = vmax.f32 %v811_v19, 0.0  ;;  %1300 = vmatmul.bf16.vlgmr.msrb.gmra.mxu2 %v3292_v48  ;;  %1476 = vmatpush.bf16.msra.mxu0 %v2328_v10 }
 0x1b0   :  { %v867_v13 = vpop.f32.mrf.mxu0 }
 0x1b1   :  { %v956_v14 = vpop.f32.mrf.mxu1  ;;  %1389 = vmatmul.bf16.vlgmr.msrb.gmra.mxu3 %v3477_v23  ;;  %v3484_v30 = vpack.c.bf16 %v1061_v26, %v1059_v22  ;;  %v868_v44 = vadd.f32 %v867_v13, %v3455_v35 }
 0x1b2   :  { %v724_v31 = vpop.f32.mrf.mxu2 }
 0x1b3   :  { %v725_v43 = vadd.f32 %v724_v31, %v3263_v6  ;;  %v813_v32 = vpop.f32.mrf.mxu3  ;;  %906 = vmatmul.bf16.gmra.mxu0 %v3286_v41  ;;  %v957_v46 = vadd.f32 %v956_v14, %v868_v44 }
 0x1b4   :  { %995 = vmatmul.bf16.gmra.mxu1 %v3288_v42 }
 0x1b5   :  { %v814_v33 = vadd.f32 %v813_v32, %v725_v43  ;;  %v1036_v53 = vmax.f32 %v957_v46, 0.0 }
 0x1b7   :  { %v1063_v55 = vmax.f32 %v814_v33, 0.0 }
 0x1b8   :  { %v869_v37 = vpop.f32.mrf.mxu0 }
 0x1b9   :  { %v870_v16 = vadd.f32 %v869_v37, %v3455_v35  ;;  %v958_v17 = vpop.f32.mrf.mxu1 }
 0x1ba   :  { %v726_v34 = vpop.f32.mrf.mxu2 }
 0x1bb   :  { %v959_v49 = vadd.f32 %v958_v17, %v870_v16  ;;  %v727_v50 = vadd.f32 %v726_v34, %v3263_v6  ;;  %v815_v41 = vpop.f32.mrf.mxu3 }
 0x1bd   :  { %v1038_v42 = vmax.f32 %v959_v49, 0.0  ;;  %v816_v54 = vadd.f32 %v815_v41, %v727_v50 }
 0x1bf   :  { %v1065_v57 = vmax.f32 %v816_v54, 0.0  ;;  %1305 = vmatmul.bf16.gmra.mxu2 %v3326_v29  ;;  %v3496_v58 = vpack.c.bf16 %v1038_v42, %v1036_v53  ;;  %v2598_v53 = vld [vmem:[%s3976_s2 + $0x68] sm:$0xff] }
 0x1c0   :  { %v872_v3 = vpop.f32.mrf.mxu0  ;;  %1964 = vmatpush.bf16.msra.mxu3 %v2598_v53  ;;  %v2589_v53 = vld [vmem:[%s3976_s2 + $0x20] sm:$0xff] }
 0x1c1   :  { %v961_v59 = vpop.f32.mrf.mxu1  ;;  %1394 = vmatmul.bf16.gmra.mxu3 %v3496_v58  ;;  %v3499_v38 = vpack.c.bf16 %v1065_v57, %v1063_v55  ;;  %v873_v62 = vadd.f32 %v872_v3, %v3455_v35  ;;  %1876 = vmatpush.bf16.msra.mxu2 %v2589_v53 }
 0x1c2   :  { %v729_v39 = vpop.f32.mrf.mxu2 }
 0x1c3   :  { %v730_v4 = vadd.f32 %v729_v39, %v3263_v6  ;;  %v818_v5 = vpop.f32.mrf.mxu3  ;;  %911 = vmatmul.bf16.gmra.mxu0 %v3314_v20  ;;  %v2389_v20 = vld [vmem:[%s3973_s1 + $0x218] sm:$0xf0] }
 0x1c4   :  { %1000 = vmatmul.bf16.gmra.mxu1 %v3316_v21  ;;  %v962_v21 = vadd.f32 %v961_v59, %v873_v62  ;;  %v2392_v19 = vor.u32 %v2571_v12, %v2389_v20 }
 0x1c5   :  { %v819_v51 = vadd.f32 %v818_v5, %v730_v4 }
 0x1c6   :  { %1565 = vmatpush.bf16.msra.mxu1 %v2392_v19  ;;  %v1040_v14 = vmax.f32 %v962_v21, 0.0  ;;  %v2553_v19 = vld [vmem:[%s3973_s1 + $0x184] sm:$0xf] }
 0x1c7   :  { %v1067_v32 = vmax.f32 %v819_v51, 0.0 }
 0x1c8   :  { %v874_v9 = vpop.f32.mrf.mxu0 }
 0x1c9   :  { %v875_v15 = vadd.f32 %v874_v9, %v3455_v35  ;;  %v963_v18 = vpop.f32.mrf.mxu1 }
 0x1ca   :  { %v731_v22 = vpop.f32.mrf.mxu2 }
 0x1cb   :  { %v964_v26 = vadd.f32 %v963_v18, %v875_v15  ;;  %v732_v27 = vadd.f32 %v731_v22, %v3263_v6  ;;  %v820_v13 = vpop.f32.mrf.mxu3  ;;  %v2317_v22 = vld [vmem:[%s3973_s1 + $0x188] sm:$0xf0] }
 0x1cd   :  { %v1042_v31 = vmax.f32 %v964_v26, 0.0  ;;  %v821_v43 = vadd.f32 %v820_v13, %v732_v27  ;;  %v2320_v27 = vor.u32 %v2553_v19, %v2317_v22  ;;  %v2569_v13 = vld [vmem:[%s3973_s1 + $0x204] sm:$0xf] }
 0x1cf   :  { %v1069_v44 = vmax.f32 %v821_v43, 0.0  ;;  %1310 = vmatmul.bf16.gmra.mxu2 %v3348_v2  ;;  %v3520_v33 = vpack.c.bf16 %v1042_v31, %v1040_v14  ;;  %1477 = vmatpush.bf16.msra.mxu0 %v2320_v27 }
 0x1d0   :  { %v877_v37 = vpop.f32.mrf.mxu0 }
 0x1d1   :  { %v966_v46 = vpop.f32.mrf.mxu1  ;;  %1399 = vmatmul.bf16.gmra.mxu3 %v3520_v33  ;;  %v3526_v16 = vpack.c.bf16 %v1069_v44, %v1067_v32  ;;  %v878_v50 = vadd.f32 %v877_v37, %v3455_v35 }
 0x1d2   :  { %v734_v17 = vpop.f32.mrf.mxu2 }
 0x1d3   :  { %v735_v34 = vadd.f32 %v734_v17, %v3263_v6  ;;  %v823_v49 = vpop.f32.mrf.mxu3  ;;  %916 = vmatmul.bf16.gmra.mxu0 %v3342_v60  ;;  %v967_v54 = vadd.f32 %v966_v46, %v878_v50 }
 0x1d4   :  { %1005 = vmatmul.bf16.gmra.mxu1 %v3344_v61 }
 0x1d5   :  { %v824_v41 = vadd.f32 %v823_v49, %v735_v34  ;;  %v1044_v4 = vmax.f32 %v967_v54, 0.0 }
 0x1d7   :  { %v1071_v62 = vmax.f32 %v824_v41, 0.0 }
 0x1d8   :  { %v879_v42 = vpop.f32.mrf.mxu0 }
 0x1d9   :  { %v880_v55 = vadd.f32 %v879_v42, %v3455_v35  ;;  %v968_v57 = vpop.f32.mrf.mxu1 }
 0x1da   :  { %v736_v3 = vpop.f32.mrf.mxu2 }
 0x1db   :  { %v969_v59 = vadd.f32 %v968_v57, %v880_v55  ;;  %v737_v39 = vadd.f32 %v736_v3, %v3263_v6  ;;  %v825_v60 = vpop.f32.mrf.mxu3 }
 0x1dd   :  { %v1046_v61 = vmax.f32 %v969_v59, 0.0  ;;  %v826_v5 = vadd.f32 %v825_v60, %v737_v39 }
 0x1df   :  { %v1073_v51 = vmax.f32 %v826_v5, 0.0  ;;  %1315 = vmatmul.bf16.gmra.mxu2 %v3382_v56  ;;  %v3538_v8 = vpack.c.bf16 %v1046_v61, %v1044_v4  ;;  %v2597_v4 = vld [vmem:[%s3976_s2 + $0x60] sm:$0xff] }
 0x1e0   :  { %v882_v52 = vpop.f32.mrf.mxu0  ;;  %1965 = vmatpush.bf16.msra.mxu3 %v2597_v4 }
 0x1e1   :  { %v971_v9 = vpop.f32.mrf.mxu1  ;;  %1404 = vmatmul.bf16.gmra.mxu3 %v3538_v8  ;;  %v3541_v10 = vpack.c.bf16 %v1073_v51, %v1071_v62  ;;  %v883_v15 = vadd.f32 %v882_v52, %v3455_v35 }
 0x1e2   :  { %v739_v12 = vpop.f32.mrf.mxu2 }
 0x1e3   :  { %v740_v20 = vadd.f32 %v739_v12, %v3263_v6  ;;  %v828_v21 = vpop.f32.mrf.mxu3  ;;  %921 = vmatmul.bf16.gmra.mxu0 %v3370_v40  ;;  %v2381_v40 = vld [vmem:[%s3973_s1 + $0x208] sm:$0xf0] }
 0x1e4   :  { %1010 = vmatmul.bf16.gmra.mxu1 %v3372_v45  ;;  %v972_v45 = vadd.f32 %v971_v9, %v883_v15  ;;  %v2384_v43 = vor.u32 %v2569_v13, %v2381_v40 }
 0x1e5   :  { %v829_v18 = vadd.f32 %v828_v21, %v740_v20 }
 0x1e6   :  { %1566 = vmatpush.bf16.msra.mxu1 %v2384_v43  ;;  %v1048_v46 = vmax.f32 %v972_v45, 0.0 }
 0x1e7   :  { %v1075_v49 = vmax.f32 %v829_v18, 0.0 }
 0x1e8   :  { %v884_v26 = vpop.f32.mrf.mxu0 }
 0x1e9   :  { %v885_v14 = vadd.f32 %v884_v26, %v3455_v35  ;;  %v973_v31 = vpop.f32.mrf.mxu1 }
 0x1ea   :  { %v741_v32 = vpop.f32.mrf.mxu2 }
 0x1eb   :  { %v974_v44 = vadd.f32 %v973_v31, %v885_v14  ;;  %v742_v36 = vadd.f32 %v741_v32, %v3263_v6  ;;  %v830_v37 = vpop.f32.mrf.mxu3 }
 0x1ed   :  { %v1050_v17 = vmax.f32 %v974_v44, 0.0  ;;  %v831_v34 = vadd.f32 %v830_v37, %v742_v36 }
 0x1ef   :  { %v1077_v50 = vmax.f32 %v831_v34, 0.0  ;;  %1320 = vmatmul.bf16.gmra.mxu2 %v3404_v28  ;;  %v3562_v41 = vpack.c.bf16 %v1050_v17, %v1048_v46 }
 0x1f0   :  { %v887_v42 = vpop.f32.mrf.mxu0 }
 0x1f1   :  { %v976_v54 = vpop.f32.mrf.mxu1  ;;  %1409 = vmatmul.bf16.gmra.mxu3 %v3562_v41  ;;  %v3568_v55 = vpack.c.bf16 %v1077_v50, %v1075_v49  ;;  %v888_v39 = vadd.f32 %v887_v42, %v3455_v35 }
 0x1f2   :  { %v744_v57 = vpop.f32.mrf.mxu2 }
 0x1f3   :  { %v745_v3 = vadd.f32 %v744_v57, %v3263_v6  ;;  %v833_v59 = vpop.f32.mrf.mxu3  ;;  %926 = vmatmul.bf16.gmra.mxu0 %v3398_v24  ;;  %v977_v5 = vadd.f32 %v976_v54, %v888_v39  ;;  %v2588_v54 = vld [vmem:[%s3976_s2 + $0x18] sm:$0xff] }
 0x1f4   :  { %1015 = vmatmul.bf16.gmra.mxu1 %v3400_v25  ;;  %1877 = vmatpush.bf16.msra.mxu2 %v2588_v54 }
 0x1f5   :  { %v834_v60 = vadd.f32 %v833_v59, %v745_v3  ;;  %v1052_v20 = vmax.f32 %v977_v5, 0.0 }
 0x1f7   :  { %v1079_v15 = vmax.f32 %v834_v60, 0.0 }
 0x1f8   :  { %v889_v61 = vpop.f32.mrf.mxu0 }
 0x1f9   :  { %v890_v62 = vadd.f32 %v889_v61, %v3455_v35  ;;  %v978_v51 = vpop.f32.mrf.mxu1 }
 0x1fa   :  { %v746_v52 = vpop.f32.mrf.mxu2 }
 0x1fb   :  { %v979_v9 = vadd.f32 %v978_v51, %v890_v62  ;;  %v747_v12 = vadd.f32 %v746_v52, %v3263_v6  ;;  %v835_v24 = vpop.f32.mrf.mxu3  ;;  %v2596_v62 = vld [vmem:[%s3976_s2 + $0x58] sm:$0xff] }
 0x1fc   :  { %1966 = vmatpush.bf16.msra.mxu3 %v2596_v62 }
 0x1fd   :  { %v1054_v25 = vmax.f32 %v979_v9, 0.0  ;;  %v836_v21 = vadd.f32 %v835_v24, %v747_v12 }
 0x1ff   :  { %v1081_v18 = vmax.f32 %v836_v21, 0.0  ;;  %1325 = vmatmul.bf16.gmra.mxu2 %v3435_v11  ;;  %v3580_v19 = vpack.c.bf16 %v1054_v25, %v1052_v20 }
 0x200   :  { %v892_v22 = vpop.f32.mrf.mxu0 }
 0x201   :  { %v981_v26 = vpop.f32.mrf.mxu1  ;;  %1414 = vmatmul.bf16.gmra.mxu3 %v3580_v19  ;;  %v3583_v27 = vpack.c.bf16 %v1081_v18, %v1079_v15  ;;  %v893_v14 = vadd.f32 %v892_v22, %v3455_v35 }
 0x202   :  { %v749_v13 = vpop.f32.mrf.mxu2 }
 0x203   :  { %v750_v40 = vadd.f32 %v749_v13, %v3263_v6  ;;  %v838_v45 = vpop.f32.mrf.mxu3  ;;  %931 = vmatmul.bf16.gmra.mxu0 %v3426_v1  ;;  %v982_v32 = vadd.f32 %v981_v26, %v893_v14 }
 0x204   :  { %1020 = vmatmul.bf16.gmra.mxu1 %v3428_v7 }
 0x205   :  { %v839_v31 = vadd.f32 %v838_v45, %v750_v40  ;;  %v1056_v49 = vmax.f32 %v982_v32, 0.0 }
 0x207   :  { %v1083_v42 = vmax.f32 %v839_v31, 0.0 }
 0x208   :  { %v894_v43 = vpop.f32.mrf.mxu0 }
 0x209   :  { %v895_v44 = vadd.f32 %v894_v43, %v3455_v35  ;;  %v983_v36 = vpop.f32.mrf.mxu1 }
 0x20a   :  { %v751_v37 = vpop.f32.mrf.mxu2 }
 0x20b   :  { %v984_v46 = vadd.f32 %v983_v36, %v895_v44  ;;  %v752_v17 = vadd.f32 %v751_v37, %v3263_v6  ;;  %v840_v34 = vpop.f32.mrf.mxu3 }
 0x20d   :  { %v1058_v50 = vmax.f32 %v984_v46, 0.0  ;;  %v841_v53 = vadd.f32 %v840_v34, %v752_v17 }
 0x20f   :  { %v1085_v1 = vmax.f32 %v841_v53, 0.0  ;;  %1330 = vmatmul.bf16.gmra.mxu2 %v3457_v0  ;;  %v3592_v7 = vpack.c.bf16 %v1058_v50, %v1056_v49 }
 0x210   :  { %v897_v57 = vpop.f32.mrf.mxu0 }
 0x211   :  { %v986_v3 = vpop.f32.mrf.mxu1  ;;  %1419 = vmatmul.bf16.gmra.mxu3 %v3592_v7  ;;  %v3598_v59 = vpack.c.bf16 %v1085_v1, %v1083_v42  ;;  %v898_v61 = vadd.f32 %v897_v57, %v3455_v35  ;;  %v3624_v42 = vld [vmem:[%s3974_s3 + $0x2] ss:$4 sm:$0x3] }
 0x212   :  { %v754_v39 = vpop.f32.mrf.mxu2 }
 0x213   :  { %v755_v60 = vadd.f32 %v754_v39, %v3263_v6  ;;  %v843_v4 = vpop.f32.mrf.mxu3  ;;  %936 = vmatmul.bf16.gmra.mxu0 %v3448_v47  ;;  %v987_v52 = vadd.f32 %v986_v3, %v898_v61  ;;  %v3630_v39 = vperm.slane %v3624_v42, 0 }
 0x214   :  { %1025 = vmatmul.bf16.gmra.mxu1 %v3450_v63 }
 0x215   :  { %v844_v5 = vadd.f32 %v843_v4, %v755_v60  ;;  %v1060_v21 = vmax.f32 %v987_v52, 0.0 }
 0x217   :  { %v1087_v18 = vmax.f32 %v844_v5, 0.0 }
 0x218   :  { %v899_v51 = vpop.f32.mrf.mxu0 }
 0x219   :  { %v900_v9 = vadd.f32 %v899_v51, %v3455_v35  ;;  %v988_v12 = vpop.f32.mrf.mxu1 }
 0x21a   :  { %v756_v24 = vpop.f32.mrf.mxu2 }
 0x21b   :  { %v989_v20 = vadd.f32 %v988_v12, %v900_v9  ;;  %v757_v25 = vadd.f32 %v756_v24, %v3263_v6  ;;  %v845_v47 = vpop.f32.mrf.mxu3  ;;  %v2595_v12 = vld [vmem:[%s3976_s2 + $0x50] sm:$0xff] }
 0x21c   :  { %1967 = vmatpush.bf16.msra.mxu3 %v2595_v12 }
 0x21d   :  { %v1062_v63 = vmax.f32 %v989_v20, 0.0  ;;  %v846_v15 = vadd.f32 %v845_v47, %v757_v25 }
 0x21f   :  { %v1089_v22 = vmax.f32 %v846_v15, 0.0  ;;  %1335 = vmatmul.bf16.gmra.mxu2 %v3484_v30  ;;  %v3610_v26 = vpack.c.bf16 %v1062_v63, %v1060_v21 }
 0x220   :  { %v902_v13 = vpop.f32.mrf.mxu0 }
 0x221   :  { %v991_v40 = vpop.f32.mrf.mxu1  ;;  %1424 = vmatmul.bf16.gmra.mxu3 %v3610_v26  ;;  %v3613_v45 = vpack.c.bf16 %v1089_v22, %v1087_v18  ;;  %v903_v32 = vadd.f32 %v902_v13, %v3455_v35 }
 0x222   :  { %v759_v14 = vpop.f32.mrf.mxu2 }
 0x223   :  { %v760_v31 = vadd.f32 %v759_v14, %v3263_v6  ;;  %v848_v43 = vpop.f32.mrf.mxu3  ;;  %1478 = vmatmul.bf16.vlgmr.msra.gmra.mxu0 %v3292_v48  ;;  %v992_v37 = vadd.f32 %v991_v40, %v903_v32 }
 0x224   :  { %1567 = vmatmul.bf16.vlgmr.msra.gmra.mxu1 %v3477_v23 }
 0x225   :  { %v849_v44 = vadd.f32 %v848_v43, %v760_v31  ;;  %v1064_v48 = vmax.f32 %v992_v37, 0.0 }
 0x227   :  { %v1091_v54 = vmax.f32 %v849_v44, 0.0 }
 0x228   :  { %v904_v36 = vpop.f32.mrf.mxu0 }
 0x229   :  { %v905_v46 = vadd.f32 %v904_v36, %v3455_v35  ;;  %v993_v17 = vpop.f32.mrf.mxu1 }
 0x22a   :  { %v761_v34 = vpop.f32.mrf.mxu2 }
 0x22b   :  { %v994_v49 = vadd.f32 %v993_v17, %v905_v46  ;;  %v762_v50 = vadd.f32 %v761_v34, %v3263_v6  ;;  %v850_v53 = vpop.f32.mrf.mxu3  ;;  %v2587_v6 = vld [vmem:[%s3976_s2 + $0x10] sm:$0xff] }
 0x22c   :  { %1878 = vmatpush.bf16.msra.mxu2 %v2587_v6 }
 0x22d   :  { %v1066_v23 = vmax.f32 %v994_v49, 0.0  ;;  %v851_v1 = vadd.f32 %v850_v53, %v762_v50 }
 0x22f   :  { %v1093_v57 = vmax.f32 %v851_v1, 0.0  ;;  %1340 = vmatmul.bf16.gmra.mxu2 %v3499_v38  ;;  %v3627_v3 = vpack.c.bf16 %v1066_v23, %v1064_v48 }
 0x230   :  { %v907_v60 = vpop.f32.mrf.mxu0 }
 0x231   :  { %v996_v4 = vpop.f32.mrf.mxu1  ;;  %1429 = vmatmul.bf16.gmra.mxu3 %v3627_v3  ;;  %v3636_v61 = vpack.c.bf16 %v1093_v57, %v1091_v54  ;;  %v908_v52 = vadd.f32 %v907_v60, %v3455_v35 }
 0x232   :  { %v1301_v5 = vpop.f32.mrf.mxu2 }
 0x233   :  { %v1302_v62 = vadd.f32 %v1301_v5, %v3630_v39  ;;  %1483 = vmatmul.bf16.gmra.mxu0 %v3326_v29  ;;  %v997_v20 = vadd.f32 %v996_v4, %v908_v52  ;;  %v2586_v5 = vld [vmem:[%s3976_s2 + $0x8] sm:$0xff] }
 0x234   :  { %1572 = vmatmul.bf16.gmra.mxu1 %v3496_v58  ;;  %v1390_v51 = vpop.f32.mrf.mxu3  ;;  %1879 = vmatpush.bf16.msra.mxu2 %v2586_v5 }
 0x235   :  { %v1391_v9 = vadd.f32 %v1390_v51, %v1302_v62  ;;  %v1068_v58 = vmax.f32 %v997_v20, 0.0 }
 0x237   :  { %v1648_v13 = vmax.f32 %v1391_v9, 0.0 }
 0x238   :  { %v909_v24 = vpop.f32.mrf.mxu0 }
 0x239   :  { %v910_v25 = vadd.f32 %v909_v24, %v3455_v35  ;;  %v998_v47 = vpop.f32.mrf.mxu1 }
 0x23a   :  { %v1303_v21 = vpop.f32.mrf.mxu2 }
 0x23b   :  { %v999_v63 = vadd.f32 %v998_v47, %v910_v25  ;;  %v1304_v29 = vadd.f32 %v1303_v21, %v3630_v39  ;;  %v2594_v47 = vld [vmem:[%s3976_s2 + $0x48] sm:$0xff] }
 0x23c   :  { %v1392_v15 = vpop.f32.mrf.mxu3  ;;  %1968 = vmatpush.bf16.msra.mxu3 %v2594_v47 }
 0x23d   :  { %v1070_v18 = vmax.f32 %v999_v63, 0.0  ;;  %v1393_v22 = vadd.f32 %v1392_v15, %v1304_v29 }
 0x23f   :  { %v1650_v40 = vmax.f32 %v1393_v22, 0.0  ;;  %1345 = vmatmul.bf16.gmra.mxu2 %v3526_v16  ;;  %v3648_v14 = vpack.c.bf16 %v1070_v18, %v1068_v58 }
 0x240   :  { %v912_v31 = vpop.f32.mrf.mxu0 }
 0x241   :  { %v3650_v43 = vpack.c.bf16 %v1650_v40, %v1648_v13  ;;  %v1001_v32 = vpop.f32.mrf.mxu1  ;;  %1434 = vmatmul.bf16.gmra.mxu3 %v3648_v14  ;;  %v913_v46 = vadd.f32 %v912_v31, %v3455_v35 }
 0x242   :  { %v1306_v44 = vpop.f32.mrf.mxu2 }
 0x243   :  { %v1307_v36 = vadd.f32 %v1306_v44, %v3630_v39  ;;  %1488 = vmatmul.bf16.gmra.mxu0 %v3348_v2  ;;  %v1002_v49 = vadd.f32 %v1001_v32, %v913_v46 }
 0x244   :  { %1577 = vmatmul.bf16.gmra.mxu1 %v3520_v33  ;;  %v1395_v37 = vpop.f32.mrf.mxu3 }
 0x245   :  { %v1396_v17 = vadd.f32 %v1395_v37, %v1307_v36  ;;  %v1072_v57 = vmax.f32 %v1002_v49, 0.0 }
 0x247   :  { %v1652_v2 = vmax.f32 %v1396_v17, 0.0 }
 0x248   :  { %v914_v34 = vpop.f32.mrf.mxu0 }
 0x249   :  { %v915_v50 = vadd.f32 %v914_v34, %v3455_v35  ;;  %v1003_v53 = vpop.f32.mrf.mxu1 }
 0x24a   :  { %v1308_v48 = vpop.f32.mrf.mxu2 }
 0x24b   :  { %v1004_v23 = vadd.f32 %v1003_v53, %v915_v50  ;;  %v1309_v1 = vadd.f32 %v1308_v48, %v3630_v39 }
 0x24c   :  { %v1397_v54 = vpop.f32.mrf.mxu3 }
 0x24d   :  { %v1074_v6 = vmax.f32 %v1004_v23, 0.0  ;;  %v1398_v60 = vadd.f32 %v1397_v54, %v1309_v1 }
 0x24f   :  { %v1654_v4 = vmax.f32 %v1398_v60, 0.0  ;;  %1350 = vmatmul.bf16.gmra.mxu2 %v3541_v10  ;;  %v3660_v33 = vpack.c.bf16 %v1074_v6, %v1072_v57 }
 0x250   :  { %v917_v62 = vpop.f32.mrf.mxu0 }
 0x251   :  { %v1006_v51 = vpop.f32.mrf.mxu1  ;;  %1439 = vmatmul.bf16.gmra.mxu3 %v3660_v33  ;;  %v3666_v52 = vpack.c.bf16 %v1654_v4, %v1652_v2  ;;  %v918_v20 = vadd.f32 %v917_v62, %v3455_v35 }
 0x252   :  { %v1311_v9 = vpop.f32.mrf.mxu2 }
 0x253   :  { %v1312_v12 = vadd.f32 %v1311_v9, %v3630_v39  ;;  %1493 = vmatmul.bf16.gmra.mxu0 %v3382_v56  ;;  %v1007_v63 = vadd.f32 %v1006_v51, %v918_v20  ;;  %v2585_v9 = vld [vmem:[%s3976_s2] sm:$0xff] }
 0x254   :  { %1582 = vmatmul.bf16.gmra.mxu1 %v3538_v8  ;;  %v1400_v24 = vpop.f32.mrf.mxu3  ;;  %1880 = vmatpush.bf16.msra.mxu2 %v2585_v9 }
 0x255   :  { %v1401_v25 = vadd.f32 %v1400_v24, %v1312_v12  ;;  %v1076_v8 = vmax.f32 %v1007_v63, 0.0 }
 0x257   :  { %v1656_v31 = vmax.f32 %v1401_v25, 0.0 }
 0x258   :  { %v919_v21 = vpop.f32.mrf.mxu0 }
 0x259   :  { %v920_v29 = vadd.f32 %v919_v21, %v3455_v35  ;;  %v1008_v15 = vpop.f32.mrf.mxu1 }
 0x25a   :  { %v1313_v58 = vpop.f32.mrf.mxu2 }
 0x25b   :  { %v1009_v18 = vadd.f32 %v1008_v15, %v920_v29  ;;  %v1314_v56 = vadd.f32 %v1313_v58, %v3630_v39  ;;  %v2593_v15 = vld [vmem:[%s3976_s2 + $0x40] sm:$0xff] }
 0x25c   :  { %v1402_v22 = vpop.f32.mrf.mxu3  ;;  %1969 = vmatpush.bf16.msra.mxu3 %v2593_v15 }
 0x25d   :  { %v1078_v13 = vmax.f32 %v1009_v18, 0.0  ;;  %v1403_v40 = vadd.f32 %v1402_v22, %v1314_v56 }
 0x25f   :  { %v1658_v32 = vmax.f32 %v1403_v40, 0.0  ;;  %1355 = vmatmul.bf16.gmra.mxu2 %v3568_v55  ;;  %v3678_v44 = vpack.c.bf16 %v1078_v13, %v1076_v8 }
 0x260   :  { %v922_v36 = vpop.f32.mrf.mxu0 }
 0x261   :  { %v1011_v37 = vpop.f32.mrf.mxu1  ;;  %1444 = vmatmul.bf16.gmra.mxu3 %v3678_v44  ;;  %v3681_v46 = vpack.c.bf16 %v1658_v32, %v1656_v31  ;;  %v923_v50 = vadd.f32 %v922_v36, %v3455_v35 }
 0x262   :  { %v1316_v17 = vpop.f32.mrf.mxu2 }
 0x263   :  { %v1317_v34 = vadd.f32 %v1316_v17, %v3630_v39  ;;  %1498 = vmatmul.bf16.gmra.mxu0 %v3404_v28  ;;  %v1012_v23 = vadd.f32 %v1011_v37, %v923_v50 }
 0x264   :  { %1587 = vmatmul.bf16.gmra.mxu1 %v3562_v41  ;;  %v1405_v49 = vpop.f32.mrf.mxu3 }
 0x265   :  { %v1406_v53 = vadd.f32 %v1405_v49, %v1317_v34  ;;  %v1080_v4 = vmax.f32 %v1012_v23, 0.0 }
 0x267   :  { %v1660_v28 = vmax.f32 %v1406_v53, 0.0 }
 0x268   :  { %v924_v48 = vpop.f32.mrf.mxu0 }
 0x269   :  { %v925_v1 = vadd.f32 %v924_v48, %v3455_v35  ;;  %v1013_v54 = vpop.f32.mrf.mxu1 }
 0x26a   :  { %v1318_v57 = vpop.f32.mrf.mxu2 }
 0x26b   :  { %v1014_v6 = vadd.f32 %v1013_v54, %v925_v1  ;;  %v1319_v60 = vadd.f32 %v1318_v57, %v3630_v39 }
 0x26c   :  { %v1407_v2 = vpop.f32.mrf.mxu3 }
 0x26d   :  { %v1082_v5 = vmax.f32 %v1014_v6, 0.0  ;;  %v1408_v62 = vadd.f32 %v1407_v2, %v1319_v60 }
 0x26f   :  { %v1662_v51 = vmax.f32 %v1408_v62, 0.0  ;;  %1360 = vmatmul.bf16.gmra.mxu2 %v3583_v27  ;;  %v3690_v41 = vpack.c.bf16 %v1082_v5, %v1080_v4 }
 0x270   :  { %v927_v12 = vpop.f32.mrf.mxu0 }
 0x271   :  { %v1016_v24 = vpop.f32.mrf.mxu1  ;;  %1449 = vmatmul.bf16.gmra.mxu3 %v3690_v41  ;;  %v3696_v20 = vpack.c.bf16 %v1662_v51, %v1660_v28  ;;  %v928_v63 = vadd.f32 %v927_v12, %v3455_v35 }
 0x272   :  { %v1321_v25 = vpop.f32.mrf.mxu2 }
 0x273   :  { %v1322_v47 = vadd.f32 %v1321_v25, %v3630_v39  ;;  %1503 = vmatmul.bf16.gmra.mxu0 %v3435_v11  ;;  %v1017_v18 = vadd.f32 %v1016_v24, %v928_v63 }
 0x274   :  { %1592 = vmatmul.bf16.gmra.mxu1 %v3580_v19  ;;  %v1410_v21 = vpop.f32.mrf.mxu3 }
 0x275   :  { %v1411_v29 = vadd.f32 %v1410_v21, %v1322_v47  ;;  %v1084_v19 = vmax.f32 %v1017_v18, 0.0 }
 0x277   :  { %v1664_v36 = vmax.f32 %v1411_v29, 0.0 }
 0x278   :  { %v929_v58 = vpop.f32.mrf.mxu0 }
 0x279   :  { %v930_v56 = vadd.f32 %v929_v58, %v3455_v35  ;;  %v1018_v22 = vpop.f32.mrf.mxu1 }
 0x27a   :  { %v1323_v8 = vpop.f32.mrf.mxu2 }
 0x27b   :  { %v1019_v13 = vadd.f32 %v1018_v22, %v930_v56  ;;  %v1324_v11 = vadd.f32 %v1323_v8, %v3630_v39 }
 0x27c   :  { %v1412_v40 = vpop.f32.mrf.mxu3 }
 0x27d   :  { %v1086_v31 = vmax.f32 %v1019_v13, 0.0  ;;  %v1413_v32 = vadd.f32 %v1412_v40, %v1324_v11 }
 0x27f   :  { %v1666_v37 = vmax.f32 %v1413_v32, 0.0  ;;  %1365 = vmatmul.bf16.gmra.mxu2 %v3598_v59  ;;  %v3708_v17 = vpack.c.bf16 %v1086_v31, %v1084_v19 }
 0x280   :  { %v932_v34 = vpop.f32.mrf.mxu0 }
 0x281   :  { %v1021_v49 = vpop.f32.mrf.mxu1  ;;  %1454 = vmatmul.bf16.gmra.mxu3 %v3708_v17  ;;  %v3711_v50 = vpack.c.bf16 %v1666_v37, %v1664_v36  ;;  %v933_v1 = vadd.f32 %v932_v34, %v3455_v35 }
 0x282   :  { %v1326_v53 = vpop.f32.mrf.mxu2 }
 0x283   :  { %v1327_v48 = vadd.f32 %v1326_v53, %v3630_v39  ;;  %1508 = vmatmul.bf16.gmra.mxu0 %v3457_v0  ;;  %v1022_v6 = vadd.f32 %v1021_v49, %v933_v1  ;;  %v3735_v53 = vperm.slane %v3624_v42, 1 }
 0x284   :  { %1597 = vmatmul.bf16.gmra.mxu1 %v3592_v7  ;;  %v1415_v23 = vpop.f32.mrf.mxu3 }
 0x285   :  { %v1416_v54 = vadd.f32 %v1415_v23, %v1327_v48  ;;  %v1088_v51 = vmax.f32 %v1022_v6, 0.0 }
 0x287   :  { %v1668_v0 = vmax.f32 %v1416_v54, 0.0 }
 0x288   :  { %v934_v57 = vpop.f32.mrf.mxu0 }
 0x289   :  { %v935_v60 = vadd.f32 %v934_v57, %v3455_v35  ;;  %v1023_v2 = vpop.f32.mrf.mxu1 }
 0x28a   :  { %v1328_v4 = vpop.f32.mrf.mxu2 }
 0x28b   :  { %v1024_v5 = vadd.f32 %v1023_v2, %v935_v60  ;;  %v1329_v62 = vadd.f32 %v1328_v4, %v3630_v39 }
 0x28c   :  { %v1417_v28 = vpop.f32.mrf.mxu3 }
 0x28d   :  { %v1090_v9 = vmax.f32 %v1024_v5, 0.0  ;;  %v1418_v12 = vadd.f32 %v1417_v28, %v1329_v62 }
 0x28f   :  { %v1670_v24 = vmax.f32 %v1418_v12, 0.0  ;;  %1370 = vmatmul.bf16.gmra.mxu2 %v3613_v45  ;;  %v3720_v7 = vpack.c.bf16 %v1090_v9, %v1088_v51 }
 0x290   :  { %v937_v25 = vpop.f32.mrf.mxu0 }
 0x291   :  { %v1026_v47 = vpop.f32.mrf.mxu1  ;;  %1459 = vmatmul.bf16.gmra.mxu3 %v3720_v7  ;;  %v3723_v21 = vpack.c.bf16 %v1670_v24, %v1668_v0  ;;  %v938_v58 = vadd.f32 %v937_v25, %v3455_v35 }
 0x292   :  { %v1331_v63 = vpop.f32.mrf.mxu2 }
 0x293   :  { %v1332_v29 = vadd.f32 %v1331_v63, %v3630_v39  ;;  %1513 = vmatmul.bf16.gmra.mxu0 %v3484_v30  ;;  %v1027_v22 = vadd.f32 %v1026_v47, %v938_v58 }
 0x294   :  { %1602 = vmatmul.bf16.gmra.mxu1 %v3610_v26  ;;  %v1420_v15 = vpop.f32.mrf.mxu3 }
 0x295   :  { %v1421_v18 = vadd.f32 %v1420_v15, %v1332_v29  ;;  %v1092_v32 = vmax.f32 %v1027_v22, 0.0 }
 0x297   :  { %v1672_v30 = vmax.f32 %v1421_v18, 0.0 }
 0x298   :  { %v939_v56 = vpop.f32.mrf.mxu0 }
 0x299   :  { %v940_v8 = vadd.f32 %v939_v56, %v3455_v35  ;;  %v1028_v13 = vpop.f32.mrf.mxu1 }
 0x29a   :  { %v1333_v11 = vpop.f32.mrf.mxu2 }
 0x29b   :  { %v1029_v40 = vadd.f32 %v1028_v13, %v940_v8  ;;  %v1334_v19 = vadd.f32 %v1333_v11, %v3630_v39 }
 0x29c   :  { %v1422_v31 = vpop.f32.mrf.mxu3 }
 0x29d   :  { %v1094_v36 = vmax.f32 %v1029_v40, 0.0  ;;  %v1423_v37 = vadd.f32 %v1422_v31, %v1334_v19 }
 0x29f   :  { %v1674_v34 = vmax.f32 %v1423_v37, 0.0  ;;  %1375 = vmatmul.bf16.gmra.mxu2 %v3636_v61  ;;  %v3732_v26 = vpack.c.bf16 %v1094_v36, %v1092_v32 }
 0x2a0   :  { %v1479_v49 = vpop.f32.mrf.mxu0 }
 0x2a1   :  { %v1568_v35 = vpop.f32.mrf.mxu1  ;;  %1464 = vmatmul.bf16.gmra.mxu3 %v3732_v26  ;;  %v3738_v48 = vpack.c.bf16 %v1674_v34, %v1672_v30  ;;  %v1480_v57 = vadd.f32 %v1479_v49, %v3735_v53 }
 0x2a2   :  { %v1336_v23 = vpop.f32.mrf.mxu2 }
 0x2a3   :  { %v1337_v1 = vadd.f32 %v1336_v23, %v3630_v39  ;;  %1518 = vmatmul.bf16.gmra.mxu0 %v3499_v38  ;;  %v1569_v2 = vadd.f32 %v1568_v35, %v1480_v57 }
 0x2a4   :  { %1607 = vmatmul.bf16.gmra.mxu1 %v3627_v3  ;;  %v1425_v54 = vpop.f32.mrf.mxu3 }
 0x2a5   :  { %v1426_v6 = vadd.f32 %v1425_v54, %v1337_v1  ;;  %v1649_v9 = vmax.f32 %v1569_v2, 0.0 }
 0x2a7   :  { %v1676_v38 = vmax.f32 %v1426_v6, 0.0 }
 0x2a8   :  { %v1481_v60 = vpop.f32.mrf.mxu0 }
 0x2a9   :  { %v1482_v42 = vadd.f32 %v1481_v60, %v3735_v53  ;;  %v1570_v4 = vpop.f32.mrf.mxu1 }
 0x2aa   :  { %v1338_v5 = vpop.f32.mrf.mxu2 }
 0x2ab   :  { %v1571_v62 = vadd.f32 %v1570_v4, %v1482_v42  ;;  %v1339_v28 = vadd.f32 %v1338_v5, %v3630_v39 }
 0x2ac   :  { %v1427_v51 = vpop.f32.mrf.mxu3 }
 0x2ad   :  { %v1651_v12 = vmax.f32 %v1571_v62, 0.0  ;;  %v1428_v0 = vadd.f32 %v1427_v51, %v1339_v28 }
 0x2af   :  { %v1713_v24 = vpack.c.bf16 %v1651_v12, %v1649_v9  ;;  %v1678_v3 = vmax.f32 %v1428_v0, 0.0  ;;  %1881 = vmatmul.bf16.vlgmr.msra.gmra.mxu2 %v3650_v43 }
 0x2b0   :  { %v1484_v25 = vpop.f32.mrf.mxu0 }
 0x2b1   :  { %v1573_v47 = vpop.f32.mrf.mxu1  ;;  %1970 = vmatmul.bf16.vlgmr.msra.gmra.mxu3 %v1713_v24  ;;  %v3747_v63 = vpack.c.bf16 %v1678_v3, %v1676_v38  ;;  %v1485_v18 = vadd.f32 %v1484_v25, %v3735_v53 }
 0x2b2   :  { %v1341_v29 = vpop.f32.mrf.mxu2 }
 0x2b3   :  { %v1342_v15 = vadd.f32 %v1341_v29, %v3630_v39  ;;  %1523 = vmatmul.bf16.gmra.mxu0 %v3526_v16  ;;  %v1574_v8 = vadd.f32 %v1573_v47, %v1485_v18 }
 0x2b4   :  { %1612 = vmatmul.bf16.gmra.mxu1 %v3648_v14  ;;  %v1430_v58 = vpop.f32.mrf.mxu3 }
 0x2b5   :  { %v1431_v56 = vadd.f32 %v1430_v58, %v1342_v15  ;;  %v1653_v32 = vmax.f32 %v1574_v8, 0.0 }
 0x2b7   :  { %v1680_v16 = vmax.f32 %v1431_v56, 0.0 }
 0x2b8   :  { %v1486_v22 = vpop.f32.mrf.mxu0 }
 0x2b9   :  { %v1487_v43 = vadd.f32 %v1486_v22, %v3735_v53  ;;  %v1575_v13 = vpop.f32.mrf.mxu1 }
 0x2ba   :  { %v1343_v11 = vpop.f32.mrf.mxu2 }
 0x2bb   :  { %v1576_v40 = vadd.f32 %v1575_v13, %v1487_v43  ;;  %v1344_v19 = vadd.f32 %v1343_v11, %v3630_v39 }
 0x2bc   :  { %v1432_v31 = vpop.f32.mrf.mxu3 }
 0x2bd   :  { %v1655_v36 = vmax.f32 %v1576_v40, 0.0  ;;  %v1433_v37 = vadd.f32 %v1432_v31, %v1344_v19 }
 0x2bf   :  { %v1682_v30 = vmax.f32 %v1433_v37, 0.0  ;;  %1886 = vmatmul.bf16.gmra.mxu2 %v3666_v52  ;;  %v1715_v14 = vpack.c.bf16 %v1655_v36, %v1653_v32 }
 0x2c0   :  { %v1489_v34 = vpop.f32.mrf.mxu0 }
 0x2c1   :  { %v1578_v49 = vpop.f32.mrf.mxu1  ;;  %1975 = vmatmul.bf16.gmra.mxu3 %v1715_v14  ;;  %v3756_v35 = vpack.c.bf16 %v1682_v30, %v1680_v16  ;;  %v1490_v57 = vadd.f32 %v1489_v34, %v3735_v53 }
 0x2c2   :  { %v1346_v23 = vpop.f32.mrf.mxu2 }
 0x2c3   :  { %v1347_v1 = vadd.f32 %v1346_v23, %v3630_v39  ;;  %1528 = vmatmul.bf16.gmra.mxu0 %v3541_v10  ;;  %v1579_v2 = vadd.f32 %v1578_v49, %v1490_v57 }
 0x2c4   :  { %1617 = vmatmul.bf16.gmra.mxu1 %v3660_v33  ;;  %v1435_v54 = vpop.f32.mrf.mxu3 }
 0x2c5   :  { %v1436_v6 = vadd.f32 %v1435_v54, %v1347_v1  ;;  %v1657_v51 = vmax.f32 %v1579_v2, 0.0 }
 0x2c7   :  { %v1684_v10 = vmax.f32 %v1436_v6, 0.0 }
 0x2c8   :  { %v1491_v60 = vpop.f32.mrf.mxu0 }
 0x2c9   :  { %v1492_v52 = vadd.f32 %v1491_v60, %v3735_v53  ;;  %v1580_v42 = vpop.f32.mrf.mxu1 }
 0x2ca   :  { %v1348_v4 = vpop.f32.mrf.mxu2 }
 0x2cb   :  { %v1581_v5 = vadd.f32 %v1580_v42, %v1492_v52  ;;  %v1349_v62 = vadd.f32 %v1348_v4, %v3630_v39 }
 0x2cc   :  { %v1437_v28 = vpop.f32.mrf.mxu3 }
 0x2cd   :  { %v1659_v9 = vmax.f32 %v1581_v5, 0.0  ;;  %v1438_v12 = vadd.f32 %v1437_v28, %v1349_v62 }
 0x2cf   :  { %v1686_v0 = vmax.f32 %v1438_v12, 0.0  ;;  %1891 = vmatmul.bf16.gmra.mxu2 %v3681_v46  ;;  %v1717_v33 = vpack.c.bf16 %v1659_v9, %v1657_v51 }
 0x2d0   :  { %v1494_v38 = vpop.f32.mrf.mxu0 }
 0x2d1   :  { %v1583_v24 = vpop.f32.mrf.mxu1  ;;  %1980 = vmatmul.bf16.gmra.mxu3 %v1717_v33  ;;  %v3765_v3 = vpack.c.bf16 %v1686_v0, %v1684_v10  ;;  %v1495_v15 = vadd.f32 %v1494_v38, %v3735_v53 }
 0x2d2   :  { %v1351_v25 = vpop.f32.mrf.mxu2 }
 0x2d3   :  { %v1352_v47 = vadd.f32 %v1351_v25, %v3630_v39  ;;  %1533 = vmatmul.bf16.gmra.mxu0 %v3568_v55  ;;  %v1584_v56 = vadd.f32 %v1583_v24, %v1495_v15 }
 0x2d4   :  { %1622 = vmatmul.bf16.gmra.mxu1 %v3678_v44  ;;  %v1440_v29 = vpop.f32.mrf.mxu3 }
 0x2d5   :  { %v1441_v58 = vadd.f32 %v1440_v29, %v1352_v47  ;;  %v1661_v40 = vmax.f32 %v1584_v56, 0.0 }
 0x2d7   :  { %v1688_v55 = vmax.f32 %v1441_v58, 0.0 }
 0x2d8   :  { %v1496_v18 = vpop.f32.mrf.mxu0 }
 0x2d9   :  { %v1497_v46 = vadd.f32 %v1496_v18, %v3735_v53  ;;  %v1585_v22 = vpop.f32.mrf.mxu1 }
 0x2da   :  { %v1353_v8 = vpop.f32.mrf.mxu2 }
 0x2db   :  { %v1586_v43 = vadd.f32 %v1585_v22, %v1497_v46  ;;  %v1354_v13 = vadd.f32 %v1353_v8, %v3630_v39 }
 0x2dc   :  { %v1442_v11 = vpop.f32.mrf.mxu3 }
 0x2dd   :  { %v1663_v19 = vmax.f32 %v1586_v43, 0.0  ;;  %v1443_v31 = vadd.f32 %v1442_v11, %v1354_v13 }
 0x2df   :  { %v1690_v32 = vmax.f32 %v1443_v31, 0.0  ;;  %1896 = vmatmul.bf16.gmra.mxu2 %v3696_v20  ;;  %v1719_v44 = vpack.c.bf16 %v1663_v19, %v1661_v40 }
 0x2e0   :  { %v1499_v36 = vpop.f32.mrf.mxu0 }
 0x2e1   :  { %v1588_v37 = vpop.f32.mrf.mxu1  ;;  %1985 = vmatmul.bf16.gmra.mxu3 %v1719_v44  ;;  %v3774_v16 = vpack.c.bf16 %v1690_v32, %v1688_v55  ;;  %v1500_v49 = vadd.f32 %v1499_v36, %v3735_v53 }
 0x2e2   :  { %v1356_v30 = vpop.f32.mrf.mxu2 }
 0x2e3   :  { %v1357_v14 = vadd.f32 %v1356_v30, %v3630_v39  ;;  %1538 = vmatmul.bf16.gmra.mxu0 %v3583_v27  ;;  %v1589_v54 = vadd.f32 %v1588_v37, %v1500_v49 }
 0x2e4   :  { %1627 = vmatmul.bf16.gmra.mxu1 %v3690_v41  ;;  %v1445_v34 = vpop.f32.mrf.mxu3 }
 0x2e5   :  { %v1446_v23 = vadd.f32 %v1445_v34, %v1357_v14  ;;  %v1665_v42 = vmax.f32 %v1589_v54, 0.0 }
 0x2e7   :  { %v1692_v27 = vmax.f32 %v1446_v23, 0.0 }
 0x2e8   :  { %v1501_v1 = vpop.f32.mrf.mxu0 }
 0x2e9   :  { %v1502_v20 = vadd.f32 %v1501_v1, %v3735_v53  ;;  %v1590_v57 = vpop.f32.mrf.mxu1 }
 0x2ea   :  { %v1358_v6 = vpop.f32.mrf.mxu2 }
 0x2eb   :  { %v1591_v60 = vadd.f32 %v1590_v57, %v1502_v20  ;;  %v1359_v2 = vadd.f32 %v1358_v6, %v3630_v39 }
 0x2ec   :  { %v1447_v52 = vpop.f32.mrf.mxu3 }
 0x2ed   :  { %v1667_v4 = vmax.f32 %v1591_v60, 0.0  ;;  %v1448_v5 = vadd.f32 %v1447_v52, %v1359_v2 }
 0x2ef   :  { %v1721_v62 = vpack.c.bf16 %v1667_v4, %v1665_v42  ;;  %v1694_v41 = vmax.f32 %v1448_v5, 0.0  ;;  %1901 = vmatmul.bf16.gmra.mxu2 %v3711_v50 }
 0x2f0   :  { %v1504_v28 = vpop.f32.mrf.mxu0 }
 0x2f1   :  { %v1593_v51 = vpop.f32.mrf.mxu1  ;;  %1990 = vmatmul.bf16.gmra.mxu3 %v1721_v62  ;;  %v3783_v9 = vpack.c.bf16 %v1694_v41, %v1692_v27  ;;  %v1505_v33 = vadd.f32 %v1504_v28, %v3735_v53 }
 0x2f2   :  { %v1361_v12 = vpop.f32.mrf.mxu2 }
 0x2f3   :  { %v1362_v10 = vadd.f32 %v1361_v12, %v3630_v39  ;;  %1543 = vmatmul.bf16.gmra.mxu0 %v3598_v59  ;;  %v1594_v25 = vadd.f32 %v1593_v51, %v1505_v33 }
 0x2f4   :  { %1632 = vmatmul.bf16.gmra.mxu1 %v3708_v17  ;;  %v1450_v0 = vpop.f32.mrf.mxu3 }
 0x2f5   :  { %v1451_v38 = vadd.f32 %v1450_v0, %v1362_v10  ;;  %v1669_v56 = vmax.f32 %v1594_v25, 0.0 }
 0x2f7   :  { %v1696_v59 = vmax.f32 %v1451_v38, 0.0 }
 0x2f8   :  { %v1506_v24 = vpop.f32.mrf.mxu0 }
 0x2f9   :  { %v1507_v50 = vadd.f32 %v1506_v24, %v3735_v53  ;;  %v1595_v47 = vpop.f32.mrf.mxu1 }
 0x2fa   :  { %v1363_v29 = vpop.f32.mrf.mxu2 }
 0x2fb   :  { %v1596_v15 = vadd.f32 %v1595_v47, %v1507_v50  ;;  %v1364_v58 = vadd.f32 %v1363_v29, %v3630_v39 }
 0x2fc   :  { %v1452_v18 = vpop.f32.mrf.mxu3 }
 0x2fd   :  { %v1671_v46 = vmax.f32 %v1596_v15, 0.0  ;;  %v1453_v22 = vadd.f32 %v1452_v18, %v1364_v58 }
 0x2ff   :  { %v1723_v8 = vpack.c.bf16 %v1671_v46, %v1669_v56  ;;  %v1698_v17 = vmax.f32 %v1453_v22, 0.0  ;;  %1906 = vmatmul.bf16.gmra.mxu2 %v3723_v21 }
 0x300   :  { %v1509_v43 = vpop.f32.mrf.mxu0 }
 0x301   :  { %v1598_v13 = vpop.f32.mrf.mxu1  ;;  %1995 = vmatmul.bf16.gmra.mxu3 %v1723_v8  ;;  %v3792_v11 = vpack.c.bf16 %v1698_v17, %v1696_v59  ;;  %v1510_v55 = vadd.f32 %v1509_v43, %v3735_v53 }
 0x302   :  { %v1366_v40 = vpop.f32.mrf.mxu2 }
 0x303   :  { %v1367_v19 = vadd.f32 %v1366_v40, %v3630_v39  ;;  %1548 = vmatmul.bf16.gmra.mxu0 %v3613_v45  ;;  %v1599_v36 = vadd.f32 %v1598_v13, %v1510_v55 }
 0x304   :  { %1637 = vmatmul.bf16.gmra.mxu1 %v3720_v7  ;;  %v1455_v31 = vpop.f32.mrf.mxu3 }
 0x305   :  { %v1456_v32 = vadd.f32 %v1455_v31, %v1367_v19  ;;  %v1673_v23 = vmax.f32 %v1599_v36, 0.0  ;;  %v3820_v36 = vld [vmem:[%s3974_s3 + $0x3] ss:$0 sm:$0xff] }
 0x307   :  { %v1700_v45 = vmax.f32 %v1456_v32, 0.0 }
 0x308   :  { %v1511_v44 = vpop.f32.mrf.mxu0 }
 0x309   :  { %v1512_v21 = vadd.f32 %v1511_v44, %v3735_v53  ;;  %v1600_v37 = vpop.f32.mrf.mxu1 }
 0x30a   :  { %v1368_v30 = vpop.f32.mrf.mxu2 }
 0x30b   :  { %v1601_v14 = vadd.f32 %v1600_v37, %v1512_v21  ;;  %v1369_v34 = vadd.f32 %v1368_v30, %v3630_v39 }
 0x30c   :  { %v1457_v49 = vpop.f32.mrf.mxu3 }
 0x30d   :  { %v1675_v1 = vmax.f32 %v1601_v14, 0.0  ;;  %v1458_v54 = vadd.f32 %v1457_v49, %v1369_v34 }
 0x30f   :  { %v1725_v20 = vpack.c.bf16 %v1675_v1, %v1673_v23  ;;  %v1702_v7 = vmax.f32 %v1458_v54, 0.0  ;;  %1911 = vmatmul.bf16.gmra.mxu2 %v3738_v48 }
 0x310   :  { %v1514_v57 = vpop.f32.mrf.mxu0 }
 0x311   :  { %v1603_v6 = vpop.f32.mrf.mxu1  ;;  %2000 = vmatmul.bf16.gmra.mxu3 %v1725_v20  ;;  %v3801_v60 = vpack.c.bf16 %v1702_v7, %v1700_v45  ;;  %v1515_v4 = vadd.f32 %v1514_v57, %v3735_v53 }
 0x312   :  { %v1371_v2 = vpop.f32.mrf.mxu2 }
 0x313   :  { %v1372_v52 = vadd.f32 %v1371_v2, %v3630_v39  ;;  %1553 = vmatmul.bf16.gmra.mxu0 %v3636_v61  ;;  %v1604_v62 = vadd.f32 %v1603_v6, %v1515_v4 }
 0x314   :  { %1642 = vmatmul.bf16.gmra.mxu1 %v3732_v26  ;;  %v1460_v42 = vpop.f32.mrf.mxu3 }
 0x315   :  { %v1461_v5 = vadd.f32 %v1460_v42, %v1372_v52  ;;  %v1677_v0 = vmax.f32 %v1604_v62, 0.0 }
 0x317   :  { %v1704_v61 = vmax.f32 %v1461_v5, 0.0 }
 0x318   :  { %v1516_v27 = vpop.f32.mrf.mxu0 }
 0x319   :  { %v1517_v48 = vadd.f32 %v1516_v27, %v3735_v53  ;;  %v1605_v41 = vpop.f32.mrf.mxu1 }
 0x31a   :  { %v1373_v28 = vpop.f32.mrf.mxu2 }
 0x31b   :  { %v1606_v51 = vadd.f32 %v1605_v41, %v1517_v48  ;;  %v1374_v12 = vadd.f32 %v1373_v28, %v3630_v39 }
 0x31c   :  { %v1462_v10 = vpop.f32.mrf.mxu3 }
 0x31d   :  { %v1679_v33 = vmax.f32 %v1606_v51, 0.0  ;;  %v1463_v38 = vadd.f32 %v1462_v10, %v1374_v12 }
 0x31f   :  { %v1727_v24 = vpack.c.bf16 %v1679_v33, %v1677_v0  ;;  %v1706_v26 = vmax.f32 %v1463_v38, 0.0  ;;  %1916 = vmatmul.bf16.gmra.mxu2 %v3747_v63 }
 0x320   :  { %v1519_v25 = vpop.f32.mrf.mxu0 }
 0x321   :  { %v1608_v50 = vpop.f32.mrf.mxu1  ;;  %2005 = vmatmul.bf16.gmra.mxu3 %v1727_v24  ;;  %v3810_v47 = vpack.c.bf16 %v1706_v26, %v1704_v61  ;;  %v1520_v18 = vadd.f32 %v1519_v25, %v3735_v53 }
 0x322   :  { %v1376_v29 = vpop.f32.mrf.mxu2 }
 0x323   :  { %v1377_v15 = vadd.f32 %v1376_v29, %v3630_v39  ;;  %v1609_v22 = vadd.f32 %v1608_v50, %v1520_v18 }
 0x324   :  { %v1465_v58 = vpop.f32.mrf.mxu3 }
 0x325   :  { %v1466_v56 = vadd.f32 %v1465_v58, %v1377_v15  ;;  %v1681_v40 = vmax.f32 %v1609_v22, 0.0 }
 0x327   :  { %v1708_v55 = vmax.f32 %v1466_v56, 0.0 }
 0x328   :  { %v1521_v46 = vpop.f32.mrf.mxu0 }
 0x329   :  { %v1522_v59 = vadd.f32 %v1521_v46, %v3735_v53  ;;  %v1610_v8 = vpop.f32.mrf.mxu1 }
 0x32a   :  { %v1378_v17 = vpop.f32.mrf.mxu2 }
 0x32b   :  { %v1611_v43 = vadd.f32 %v1610_v8, %v1522_v59  ;;  %v1379_v63 = vadd.f32 %v1378_v17, %v3630_v39 }
 0x32c   :  { %v1467_v13 = vpop.f32.mrf.mxu3 }
 0x32d   :  { %v1683_v19 = vmax.f32 %v1611_v43, 0.0  ;;  %v1468_v31 = vadd.f32 %v1467_v13, %v1379_v63 }
 0x32f   :  { %v1729_v32 = vpack.c.bf16 %v1683_v19, %v1681_v40  ;;  %v1710_v44 = vmax.f32 %v1468_v31, 0.0  ;;  %1921 = vmatmul.bf16.gmra.mxu2 %v3756_v35 }
 0x330   :  { %v1524_v21 = vpop.f32.mrf.mxu0 }
 0x331   :  { %v1613_v37 = vpop.f32.mrf.mxu1  ;;  %2010 = vmatmul.bf16.gmra.mxu3 %v1729_v32  ;;  %v3822_v30 = vpack.c.bf16 %v1710_v44, %v1708_v55  ;;  %v1525_v49 = vadd.f32 %v1524_v21, %v3735_v53 }
 0x332   :  { %v1882_v39 = vpop.f32.mrf.mxu2 }
 0x333   :  { %v1883_v14 = vadd.f32 %v3820_v36, %v1882_v39  ;;  %v1614_v35 = vadd.f32 %v1613_v37, %v1525_v49 }
 0x334   :  { %v1971_v34 = vpop.f32.mrf.mxu3 }
 0x335   :  { %v1972_v23 = vadd.f32 %v1971_v34, %v1883_v14  ;;  %v1685_v52 = vmax.f32 %v1614_v35, 0.0 }
 0x337   :  { %2602 = vtanh.f32 %v1972_v23 }
 0x338   :  { %v1526_v1 = vpop.f32.mrf.mxu0 }
 0x339   :  { %v1527_v54 = vadd.f32 %v1526_v1, %v3735_v53  ;;  %v1615_v45 = vpop.f32.mrf.mxu1 }
 0x33a   :  { %v1884_v20 = vpop.f32.mrf.mxu2 }
 0x33b   :  { %v1616_v7 = vadd.f32 %v1615_v45, %v1527_v54  ;;  %v1885_v57 = vadd.f32 %v3820_v36, %v1884_v20 }
 0x33c   :  { %v1973_v6 = vpop.f32.mrf.mxu3 }
 0x33d   :  { %v2603_v2 = vpop.eup %2602  ;;  %v1687_v42 = vmax.f32 %v1616_v7, 0.0  ;;  %v1974_v4 = vadd.f32 %v1973_v6, %v1885_v57 }
 0x33e   :  { %2083 = vst [vmem:[%s3977_s4] sm:$0xff] %v2603_v2 }
 0x33f   :  { %v1731_v5 = vpack.c.bf16 %v1687_v42, %v1685_v52  ;;  %2604 = vtanh.f32 %v1974_v4  ;;  %1926 = vmatmul.bf16.gmra.mxu2 %v3765_v3 }
 0x340   :  { %v1529_v27 = vpop.f32.mrf.mxu0 }
 0x341   :  { %v1618_v62 = vpop.f32.mrf.mxu1  ;;  %2015 = vmatmul.bf16.gmra.mxu3 %v1731_v5  ;;  %v1530_v12 = vadd.f32 %v1529_v27, %v3735_v53 }
 0x342   :  { %v1887_v48 = vpop.f32.mrf.mxu2 }
 0x343   :  { %v1888_v41 = vadd.f32 %v3820_v36, %v1887_v48  ;;  %v1619_v33 = vadd.f32 %v1618_v62, %v1530_v12 }
 0x344   :  { %v1976_v28 = vpop.f32.mrf.mxu3 }
 0x345   :  { %v2605_v51 = vpop.eup %2604  ;;  %v1977_v10 = vadd.f32 %v1976_v28, %v1888_v41  ;;  %v1689_v29 = vmax.f32 %v1619_v33, 0.0 }
 0x346   :  { %2084 = vst [vmem:[%s3977_s4 + $0x8] sm:$0xff] %v2605_v51 }
 0x347   :  { %2606 = vtanh.f32 %v1977_v10 }
 0x348   :  { %v1531_v0 = vpop.f32.mrf.mxu0 }
 0x349   :  { %v1532_v3 = vadd.f32 %v1531_v0, %v3735_v53  ;;  %v1620_v38 = vpop.f32.mrf.mxu1 }
 0x34a   :  { %v1889_v61 = vpop.f32.mrf.mxu2 }
 0x34b   :  { %v1621_v24 = vadd.f32 %v1620_v38, %v1532_v3  ;;  %v1890_v26 = vadd.f32 %v3820_v36, %v1889_v61 }
 0x34c   :  { %v1978_v25 = vpop.f32.mrf.mxu3 }
 0x34d   :  { %v2607_v50 = vpop.eup %2606  ;;  %v1691_v15 = vmax.f32 %v1621_v24, 0.0  ;;  %v1979_v58 = vadd.f32 %v1978_v25, %v1890_v26 }
 0x34e   :  { %2085 = vst [vmem:[%s3977_s4 + $0x10] sm:$0xff] %v2607_v50 }
 0x34f   :  { %v1733_v18 = vpack.c.bf16 %v1691_v15, %v1689_v29  ;;  %2608 = vtanh.f32 %v1979_v58  ;;  %1931 = vmatmul.bf16.gmra.mxu2 %v3774_v16 }
 0x350   :  { %v1534_v56 = vpop.f32.mrf.mxu0 }
 0x351   :  { %v1623_v46 = vpop.f32.mrf.mxu1  ;;  %2020 = vmatmul.bf16.gmra.mxu3 %v1733_v18  ;;  %v1535_v43 = vadd.f32 %v1534_v56, %v3735_v53 }
 0x352   :  { %v1892_v22 = vpop.f32.mrf.mxu2 }
 0x353   :  { %v1893_v59 = vadd.f32 %v3820_v36, %v1892_v22  ;;  %v1624_v40 = vadd.f32 %v1623_v46, %v1535_v43 }
 0x354   :  { %v1981_v8 = vpop.f32.mrf.mxu3 }
 0x355   :  { %v2609_v17 = vpop.eup %2608  ;;  %v1982_v63 = vadd.f32 %v1981_v8, %v1893_v59  ;;  %v1693_v37 = vmax.f32 %v1624_v40, 0.0 }
 0x356   :  { %2086 = vst [vmem:[%s3977_s4 + $0x18] sm:$0xff] %v2609_v17 }
 0x357   :  { %2610 = vtanh.f32 %v1982_v63 }
 0x358   :  { %v1536_v13 = vpop.f32.mrf.mxu0 }
 0x359   :  { %v1537_v16 = vadd.f32 %v1536_v13, %v3735_v53  ;;  %v1625_v19 = vpop.f32.mrf.mxu1 }
 0x35a   :  { %v1894_v31 = vpop.f32.mrf.mxu2 }
 0x35b   :  { %v1626_v55 = vadd.f32 %v1625_v19, %v1537_v16  ;;  %v1895_v32 = vadd.f32 %v3820_v36, %v1894_v31 }
 0x35c   :  { %v1983_v44 = vpop.f32.mrf.mxu3 }
 0x35d   :  { %v2611_v21 = vpop.eup %2610  ;;  %v1695_v39 = vmax.f32 %v1626_v55, 0.0  ;;  %v1984_v14 = vadd.f32 %v1983_v44, %v1895_v32 }
 0x35e   :  { %2087 = vst [vmem:[%s3977_s4 + $0x20] sm:$0xff] %v2611_v21 }
 0x35f   :  { %v1735_v34 = vpack.c.bf16 %v1695_v39, %v1693_v37  ;;  %2612 = vtanh.f32 %v1984_v14  ;;  %1936 = vmatmul.bf16.gmra.mxu2 %v3783_v9 }
 0x360   :  { %v1539_v49 = vpop.f32.mrf.mxu0 }
 0x361   :  { %v1628_v23 = vpop.f32.mrf.mxu1  ;;  %2025 = vmatmul.bf16.gmra.mxu3 %v1735_v34  ;;  %v1540_v20 = vadd.f32 %v1539_v49, %v3735_v53 }
 0x362   :  { %v1897_v1 = vpop.f32.mrf.mxu2 }
 0x363   :  { %v1898_v35 = vadd.f32 %v3820_v36, %v1897_v1  ;;  %v1629_v6 = vadd.f32 %v1628_v23, %v1540_v20 }
 0x364   :  { %v1986_v54 = vpop.f32.mrf.mxu3 }
 0x365   :  { %v2613_v45 = vpop.eup %2612  ;;  %v1987_v7 = vadd.f32 %v1986_v54, %v1898_v35  ;;  %v1697_v62 = vmax.f32 %v1629_v6, 0.0 }
 0x366   :  { %2088 = vst [vmem:[%s3977_s4 + $0x28] sm:$0xff] %v2613_v45 }
 0x367   :  { %2614 = vtanh.f32 %v1987_v7 }
 0x368   :  { %v1541_v57 = vpop.f32.mrf.mxu0 }
 0x369   :  { %v1542_v9 = vadd.f32 %v1541_v57, %v3735_v53  ;;  %v1630_v2 = vpop.f32.mrf.mxu1 }
 0x36a   :  { %v1899_v52 = vpop.f32.mrf.mxu2 }
 0x36b   :  { %v1631_v42 = vadd.f32 %v1630_v2, %v1542_v9  ;;  %v1900_v4 = vadd.f32 %v3820_v36, %v1899_v52 }
 0x36c   :  { %v1988_v5 = vpop.f32.mrf.mxu3 }
 0x36d   :  { %v2615_v27 = vpop.eup %2614  ;;  %v1699_v48 = vmax.f32 %v1631_v42, 0.0  ;;  %v1989_v41 = vadd.f32 %v1988_v5, %v1900_v4 }
 0x36e   :  { %2089 = vst [vmem:[%s3977_s4 + $0x30] sm:$0xff] %v2615_v27 }
 0x36f   :  { %v1737_v28 = vpack.c.bf16 %v1699_v48, %v1697_v62  ;;  %2616 = vtanh.f32 %v1989_v41  ;;  %1941 = vmatmul.bf16.gmra.mxu2 %v3792_v11 }
 0x370   :  { %v1544_v51 = vpop.f32.mrf.mxu0 }
 0x371   :  { %v1633_v12 = vpop.f32.mrf.mxu1  ;;  %2030 = vmatmul.bf16.gmra.mxu3 %v1737_v28  ;;  %v1545_v38 = vadd.f32 %v1544_v51, %v3735_v53 }
 0x372   :  { %v1902_v10 = vpop.f32.mrf.mxu2 }
 0x373   :  { %v1903_v0 = vadd.f32 %v3820_v36, %v1902_v10  ;;  %v1634_v26 = vadd.f32 %v1633_v12, %v1545_v38 }
 0x374   :  { %v1991_v33 = vpop.f32.mrf.mxu3 }
 0x375   :  { %v2617_v3 = vpop.eup %2616  ;;  %v1992_v61 = vadd.f32 %v1991_v33, %v1903_v0  ;;  %v1701_v56 = vmax.f32 %v1634_v26, 0.0 }
 0x376   :  { %2090 = vst [vmem:[%s3977_s4 + $0x38] sm:$0xff] %v2617_v3 }
 0x377   :  { %2618 = vtanh.f32 %v1992_v61 }
 0x378   :  { %v1546_v24 = vpop.f32.mrf.mxu0 }
 0x379   :  { %v1547_v11 = vadd.f32 %v1546_v24, %v3735_v53  ;;  %v1635_v25 = vpop.f32.mrf.mxu1 }
 0x37a   :  { %v1904_v50 = vpop.f32.mrf.mxu2 }
 0x37b   :  { %v1636_v29 = vadd.f32 %v1635_v25, %v1547_v11  ;;  %v1905_v15 = vadd.f32 %v3820_v36, %v1904_v50 }
 0x37c   :  { %v1993_v58 = vpop.f32.mrf.mxu3 }
 0x37d   :  { %v2619_v18 = vpop.eup %2618  ;;  %v1703_v46 = vmax.f32 %v1636_v29, 0.0  ;;  %v1994_v22 = vadd.f32 %v1993_v58, %v1905_v15 }
 0x37e   :  { %2091 = vst [vmem:[%s3977_s4 + $0x40] sm:$0xff] %v2619_v18 }
 0x37f   :  { %v1739_v59 = vpack.c.bf16 %v1703_v46, %v1701_v56  ;;  %2620 = vtanh.f32 %v1994_v22  ;;  %1946 = vmatmul.bf16.gmra.mxu2 %v3801_v60 }
 0x380   :  { %v1549_v8 = vpop.f32.mrf.mxu0 }
 0x381   :  { %v1638_v17 = vpop.f32.mrf.mxu1  ;;  %2035 = vmatmul.bf16.gmra.mxu3 %v1739_v59  ;;  %v1550_v16 = vadd.f32 %v1549_v8, %v3735_v53 }
 0x382   :  { %v1907_v43 = vpop.f32.mrf.mxu2 }
 0x383   :  { %v1908_v63 = vadd.f32 %v3820_v36, %v1907_v43  ;;  %v1639_v55 = vadd.f32 %v1638_v17, %v1550_v16 }
 0x384   :  { %v1996_v13 = vpop.f32.mrf.mxu3 }
 0x385   :  { %v2621_v40 = vpop.eup %2620  ;;  %v1997_v19 = vadd.f32 %v1996_v13, %v1908_v63  ;;  %v1705_v34 = vmax.f32 %v1639_v55, 0.0 }
 0x386   :  { %2092 = vst [vmem:[%s3977_s4 + $0x48] sm:$0xff] %v2621_v40 }
 0x387   :  { %2622 = vtanh.f32 %v1997_v19 }
 0x388   :  { %v1551_v31 = vpop.f32.mrf.mxu0 }
 0x389   :  { %v1552_v60 = vadd.f32 %v1551_v31, %v3735_v53  ;;  %v1640_v32 = vpop.f32.mrf.mxu1 }
 0x38a   :  { %v1909_v44 = vpop.f32.mrf.mxu2 }
 0x38b   :  { %v1641_v21 = vadd.f32 %v1640_v32, %v1552_v60  ;;  %v1910_v37 = vadd.f32 %v3820_v36, %v1909_v44 }
 0x38c   :  { %v1998_v39 = vpop.f32.mrf.mxu3 }
 0x38d   :  { %v2623_v14 = vpop.eup %2622  ;;  %v1707_v49 = vmax.f32 %v1641_v21, 0.0  ;;  %v1999_v23 = vadd.f32 %v1998_v39, %v1910_v37 }
 0x38e   :  { %2093 = vst [vmem:[%s3977_s4 + $0x50] sm:$0xff] %v2623_v14 }
 0x38f   :  { %v1741_v1 = vpack.c.bf16 %v1707_v49, %v1705_v34  ;;  %2624 = vtanh.f32 %v1999_v23  ;;  %1951 = vmatmul.bf16.gmra.mxu2 %v3810_v47 }
 0x390   :  { %v1554_v35 = vpop.f32.mrf.mxu0 }
 0x391   :  { %v1643_v54 = vpop.f32.mrf.mxu1  ;;  %2040 = vmatmul.bf16.gmra.mxu3 %v1741_v1  ;;  %v1555_v6 = vadd.f32 %v1554_v35, %v3735_v53 }
 0x392   :  { %v1912_v45 = vpop.f32.mrf.mxu2 }
 0x393   :  { %v1913_v20 = vadd.f32 %v3820_v36, %v1912_v45  ;;  %v1644_v52 = vadd.f32 %v1643_v54, %v1555_v6 }
 0x394   :  { %v2001_v7 = vpop.f32.mrf.mxu3 }
 0x395   :  { %v2625_v57 = vpop.eup %2624  ;;  %v2002_v9 = vadd.f32 %v2001_v7, %v1913_v20  ;;  %v1709_v41 = vmax.f32 %v1644_v52, 0.0 }
 0x396   :  { %2094 = vst [vmem:[%s3977_s4 + $0x58] sm:$0xff] %v2625_v57 }
 0x397   :  { %2626 = vtanh.f32 %v2002_v9 }
 0x398   :  { %v1556_v2 = vpop.f32.mrf.mxu0 }
 0x399   :  { %v1557_v47 = vadd.f32 %v1556_v2, %v3735_v53  ;;  %v1645_v42 = vpop.f32.mrf.mxu1 }
 0x39a   :  { %v1914_v4 = vpop.f32.mrf.mxu2 }
 0x39b   :  { %v1646_v5 = vadd.f32 %v1645_v42, %v1557_v47  ;;  %v1915_v27 = vadd.f32 %v3820_v36, %v1914_v4 }
 0x39c   :  { %v2003_v62 = vpop.f32.mrf.mxu3 }
 0x39d   :  { %v2627_v48 = vpop.eup %2626  ;;  %v1711_v28 = vmax.f32 %v1646_v5, 0.0  ;;  %v2004_v51 = vadd.f32 %v2003_v62, %v1915_v27 }
 0x39e   :  { %2095 = vst [vmem:[%s3977_s4 + $0x60] sm:$0xff] %v2627_v48 }
 0x39f   :  { %v1743_v12 = vpack.c.bf16 %v1711_v28, %v1709_v41  ;;  %2628 = vtanh.f32 %v2004_v51  ;;  %1956 = vmatmul.bf16.gmra.mxu2 %v3822_v30 }
 0x3a1   :  { %2045 = vmatmul.bf16.gmra.mxu3 %v1743_v12 }
 0x3a2   :  { %v1917_v53 = vpop.f32.mrf.mxu2 }
 0x3a3   :  { %v1918_v10 = vadd.f32 %v3820_v36, %v1917_v53 }
 0x3a4   :  { %v2006_v0 = vpop.f32.mrf.mxu3 }
 0x3a5   :  { %v2629_v33 = vpop.eup %2628  ;;  %v2007_v3 = vadd.f32 %v2006_v0, %v1918_v10 }
 0x3a6   :  { %2096 = vst [vmem:[%s3977_s4 + $0x68] sm:$0xff] %v2629_v33 }
 0x3a7   :  { %2630 = vtanh.f32 %v2007_v3 }
 0x3aa   :  { %v1919_v38 = vpop.f32.mrf.mxu2 }
 0x3ab   :  { %v1920_v61 = vadd.f32 %v3820_v36, %v1919_v38 }
 0x3ac   :  { %v2008_v24 = vpop.f32.mrf.mxu3 }
 0x3ad   :  { %v2631_v26 = vpop.eup %2630  ;;  %v2009_v11 = vadd.f32 %v2008_v24, %v1920_v61 }
 0x3ae   :  { %2097 = vst [vmem:[%s3977_s4 + $0x70] sm:$0xff] %v2631_v26 }
 0x3af   :  { %2632 = vtanh.f32 %v2009_v11 }
 0x3b2   :  { %v1922_v30 = vpop.f32.mrf.mxu2 }
 0x3b3   :  { %v1923_v25 = vadd.f32 %v3820_v36, %v1922_v30 }
 0x3b4   :  { %v2011_v50 = vpop.f32.mrf.mxu3 }
 0x3b5   :  { %v2633_v29 = vpop.eup %2632  ;;  %v2012_v15 = vadd.f32 %v2011_v50, %v1923_v25 }
 0x3b6   :  { %2098 = vst [vmem:[%s3977_s4 + $0x78] sm:$0xff] %v2633_v29 }
 0x3b7   :  { %2634 = vtanh.f32 %v2012_v15 }
 0x3ba   :  { %v1924_v58 = vpop.f32.mrf.mxu2 }
 0x3bb   :  { %v1925_v18 = vadd.f32 %v3820_v36, %v1924_v58 }
 0x3bc   :  { %v2013_v56 = vpop.f32.mrf.mxu3 }
 0x3bd   :  { %v2635_v46 = vpop.eup %2634  ;;  %v2014_v22 = vadd.f32 %v2013_v56, %v1925_v18 }
 0x3be   :  { %2099 = vst [vmem:[%s3977_s4 + $0x80] sm:$0xff] %v2635_v46 }
 0x3bf   :  { %2636 = vtanh.f32 %v2014_v22 }
 0x3c2   :  { %v1927_v59 = vpop.f32.mrf.mxu2 }
 0x3c3   :  { %v1928_v8 = vadd.f32 %v3820_v36, %v1927_v59 }
 0x3c4   :  { %v2016_v17 = vpop.f32.mrf.mxu3 }
 0x3c5   :  { %v2637_v43 = vpop.eup %2636  ;;  %v2017_v63 = vadd.f32 %v2016_v17, %v1928_v8 }
 0x3c6   :  { %2100 = vst [vmem:[%s3977_s4 + $0x88] sm:$0xff] %v2637_v43 }
 0x3c7   :  { %2638 = vtanh.f32 %v2017_v63 }
 0x3ca   :  { %v1929_v13 = vpop.f32.mrf.mxu2 }
 0x3cb   :  { %v1930_v40 = vadd.f32 %v3820_v36, %v1929_v13 }
 0x3cc   :  { %v2018_v16 = vpop.f32.mrf.mxu3 }
 0x3cd   :  { %v2639_v19 = vpop.eup %2638  ;;  %v2019_v31 = vadd.f32 %v2018_v16, %v1930_v40 }
 0x3ce   :  { %2101 = vst [vmem:[%s3977_s4 + $0x90] sm:$0xff] %v2639_v19 }
 0x3cf   :  { %2640 = vtanh.f32 %v2019_v31 }
 0x3d2   :  { %v1932_v55 = vpop.f32.mrf.mxu2 }
 0x3d3   :  { %v1933_v60 = vadd.f32 %v3820_v36, %v1932_v55 }
 0x3d4   :  { %v2021_v32 = vpop.f32.mrf.mxu3 }
 0x3d5   :  { %v2641_v44 = vpop.eup %2640  ;;  %v2022_v21 = vadd.f32 %v2021_v32, %v1933_v60 }
 0x3d6   :  { %2102 = vst [vmem:[%s3977_s4 + $0x98] sm:$0xff] %v2641_v44 }
 0x3d7   :  { %2642 = vtanh.f32 %v2022_v21 }
 0x3da   :  { %v1934_v37 = vpop.f32.mrf.mxu2 }
 0x3db   :  { %v1935_v39 = vadd.f32 %v3820_v36, %v1934_v37 }
 0x3dc   :  { %v2023_v14 = vpop.f32.mrf.mxu3 }
 0x3dd   :  { %v2643_v34 = vpop.eup %2642  ;;  %v2024_v49 = vadd.f32 %v2023_v14, %v1935_v39 }
 0x3de   :  { %2103 = vst [vmem:[%s3977_s4 + $0xa0] sm:$0xff] %v2643_v34 }
 0x3df   :  { %2644 = vtanh.f32 %v2024_v49 }
 0x3e2   :  { %v1937_v23 = vpop.f32.mrf.mxu2 }
 0x3e3   :  { %v1938_v1 = vadd.f32 %v3820_v36, %v1937_v23 }
 0x3e4   :  { %v2026_v35 = vpop.f32.mrf.mxu3 }
 0x3e5   :  { %v2645_v54 = vpop.eup %2644  ;;  %v2027_v45 = vadd.f32 %v2026_v35, %v1938_v1 }
 0x3e6   :  { %2104 = vst [vmem:[%s3977_s4 + $0xa8] sm:$0xff] %v2645_v54 }
 0x3e7   :  { %2646 = vtanh.f32 %v2027_v45 }
 0x3ea   :  { %v1939_v20 = vpop.f32.mrf.mxu2 }
 0x3eb   :  { %v1940_v7 = vadd.f32 %v3820_v36, %v1939_v20 }
 0x3ec   :  { %v2028_v57 = vpop.f32.mrf.mxu3 }
 0x3ed   :  { %v2647_v6 = vpop.eup %2646  ;;  %v2029_v9 = vadd.f32 %v2028_v57, %v1940_v7 }
 0x3ee   :  { %2105 = vst [vmem:[%s3977_s4 + $0xb0] sm:$0xff] %v2647_v6 }
 0x3ef   :  { %2648 = vtanh.f32 %v2029_v9 }
 0x3f2   :  { %v1942_v2 = vpop.f32.mrf.mxu2 }
 0x3f3   :  { %v1943_v52 = vadd.f32 %v3820_v36, %v1942_v2 }
 0x3f4   :  { %v2031_v47 = vpop.f32.mrf.mxu3 }
 0x3f5   :  { %v2649_v42 = vpop.eup %2648  ;;  %v2032_v4 = vadd.f32 %v2031_v47, %v1943_v52 }
 0x3f6   :  { %2106 = vst [vmem:[%s3977_s4 + $0xb8] sm:$0xff] %v2649_v42 }
 0x3f7   :  { %2650 = vtanh.f32 %v2032_v4 }
 0x3fa   :  { %v1944_v5 = vpop.f32.mrf.mxu2 }
 0x3fb   :  { %v1945_v27 = vadd.f32 %v3820_v36, %v1944_v5 }
 0x3fc   :  { %v2033_v62 = vpop.f32.mrf.mxu3 }
 0x3fd   :  { %v2651_v48 = vpop.eup %2650  ;;  %v2034_v41 = vadd.f32 %v2033_v62, %v1945_v27 }
 0x3fe   :  { %2107 = vst [vmem:[%s3977_s4 + $0xc0] sm:$0xff] %v2651_v48 }
 0x3ff   :  { %2652 = vtanh.f32 %v2034_v41 }
 0x402   :  { %v1947_v28 = vpop.f32.mrf.mxu2 }
 0x403   :  { %v1948_v51 = vadd.f32 %v3820_v36, %v1947_v28 }
 0x404   :  { %v2036_v12 = vpop.f32.mrf.mxu3 }
 0x405   :  { %v2653_v53 = vpop.eup %2652  ;;  %v2037_v10 = vadd.f32 %v2036_v12, %v1948_v51 }
 0x406   :  { %2108 = vst [vmem:[%s3977_s4 + $0xc8] sm:$0xff] %v2653_v53 }
 0x407   :  { %2654 = vtanh.f32 %v2037_v10 }
 0x40a   :  { %v1949_v0 = vpop.f32.mrf.mxu2 }
 0x40b   :  { %v1950_v33 = vadd.f32 %v3820_v36, %v1949_v0 }
 0x40c   :  { %v2038_v3 = vpop.f32.mrf.mxu3 }
 0x40d   :  { %v2655_v38 = vpop.eup %2654  ;;  %v2039_v61 = vadd.f32 %v2038_v3, %v1950_v33 }
 0x40e   :  { %2109 = vst [vmem:[%s3977_s4 + $0xd0] sm:$0xff] %v2655_v38 }
 0x40f   :  { %2656 = vtanh.f32 %v2039_v61 }
 0x412   :  { %v1952_v24 = vpop.f32.mrf.mxu2 }
 0x413   :  { %v1953_v26 = vadd.f32 %v3820_v36, %v1952_v24 }
 0x414   :  { %v2041_v11 = vpop.f32.mrf.mxu3 }
 0x415   :  { %v2657_v30 = vpop.eup %2656  ;;  %v2042_v25 = vadd.f32 %v2041_v11, %v1953_v26 }
 0x416   :  { %2110 = vst [vmem:[%s3977_s4 + $0xd8] sm:$0xff] %v2657_v30 }
 0x417   :  { %2658 = vtanh.f32 %v2042_v25 }
 0x41a   :  { %v1954_v50 = vpop.f32.mrf.mxu2 }
 0x41b   :  { %v1955_v29 = vadd.f32 %v3820_v36, %v1954_v50 }
 0x41c   :  { %v2043_v15 = vpop.f32.mrf.mxu3 }
 0x41d   :  { %v2659_v58 = vpop.eup %2658  ;;  %v2044_v18 = vadd.f32 %v2043_v15, %v1955_v29 }
 0x41e   :  { %2111 = vst [vmem:[%s3977_s4 + $0xe0] sm:$0xff] %v2659_v58 }
 0x41f   :  { %2660 = vtanh.f32 %v2044_v18 }
 0x422   :  { %v1957_v56 = vpop.f32.mrf.mxu2 }
 0x423   :  { %v1958_v46 = vadd.f32 %v3820_v36, %v1957_v56 }
 0x424   :  { %v2046_v22 = vpop.f32.mrf.mxu3 }
 0x425   :  { %v2661_v59 = vpop.eup %2660  ;;  %v2047_v8 = vadd.f32 %v2046_v22, %v1958_v46 }
 0x426   :  { %2112 = vst [vmem:[%s3977_s4 + $0xe8] sm:$0xff] %v2661_v59 }
 0x427   :  { %2662 = vtanh.f32 %v2047_v8 }
 0x42a   :  { %v1959_v17 = vpop.f32.mrf.mxu2 }
 0x42b   :  { %v1960_v43 = vadd.f32 %v3820_v36, %v1959_v17 }
 0x42c   :  { %v2048_v63 = vpop.f32.mrf.mxu3 }
 0x42d   :  { %v2663_v13 = vpop.eup %2662  ;;  %v2049_v40 = vadd.f32 %v2048_v63, %v1960_v43 }
 0x42e   :  { %2113 = vst [vmem:[%s3977_s4 + $0xf0] sm:$0xff] %v2663_v13 }
 0x42f   :  { %2664 = vtanh.f32 %v2049_v40 }
 0x435   :  { %v2665_v16 = vpop.eup %2664 }
 0x436   :  { %2114 = vst [vmem:[%s3977_s4 + $0xf8] sm:$0xff] %v2665_v16 }

</bundles_post_ra>
